<compile_context>
chip_gen: v5e
topology: v5e:2x2
jax: 0.10.0
libtpu: 0.0.40
codegen_flags: <defaults>
</compile_context>

<pallas_src>
import functools
import math

import numpy as np
import jax
import jax.numpy as jnp
from jax.experimental import pallas as pl
from jax.experimental.pallas import tpu as pltpu

# ----------------------------- model config ---------------------------------
D_MODEL = 32
NHEAD = 2
NUM_LAYERS = 2
DIM_FEEDFORWARD = 128
NUM_CLASSES = 3
SEQ_LENGTH = 5
INPUT_DIM = 16           # len(feature_cols) -- synthetic choice
LN_EPS = 1e-5

MXU_DT = jnp.bfloat16    # matmul operand dtype (accumulation stays f32)


# ------------------------------ Pallas kernel --------------------------------
def _layernorm(x, gamma, beta):
    mu = jnp.mean(x, axis=-1, keepdims=True)
    xc = x - mu
    var = jnp.mean(xc * xc, axis=-1, keepdims=True)
    return xc * jax.lax.rsqrt(var + LN_EPS) * gamma + beta


def transformer_kernel(
    x_ref,        # (TB*S, F)   f32   packed rows of TB sequences
    pe_ref,       # (TB*S, d)   f32   positional encoding, tiled per sequence
    tw_ref,       # (TB*S, 1)   f32   time-decay weights, tiled per sequence
    mask_ref,     # (TB*S, TB*S) f32  block-diagonal causal additive mask
    sel_ref,      # (TB, TB*S)  f32   selects last time step of each sequence
    w_in_ref,     # (F, d)      bf16
    b_in_ref,     # (1, d)      f32
    wqkv_ref,     # (L, d, 3d)  bf16  fused Q|K|V projection
    bqkv_ref,     # (L, 1, 3d)  f32
    wo_ref,       # (L, H, hd, d) bf16  out-proj weight split per head
    w1_ref,       # (L, d, dff) bf16
    b1_ref,       # (L, 1, dff) f32
    w2_ref,       # (L, dff, d) bf16
    vec_ref,      # (L, 6, 1, d) f32  [bo, g1, be1, g2, be2, b2]
    w_out_ref,    # (d, C)      f32
    b_out_ref,    # (1, C)      f32
    out_ref,      # (TB, C)     f32
    *,
    num_layers,
    nhead,
):
    d = w_in_ref.shape[1]
    hdim = d // nhead
    scale = 1.0 / math.sqrt(hdim)

    x = x_ref[...]                                                    # (rows, F)

    # input_linear(src) * sqrt(d_model)
    h = jnp.dot(x.astype(MXU_DT), w_in_ref[...],
                preferred_element_type=jnp.float32) + b_in_ref[...]
    h = h * math.sqrt(d)
    # positional encoding (dropout is identity in eval) + time-decay weights
    h = (h + pe_ref[...]) * tw_ref[...]

    bias = mask_ref[...]                                              # (rows, rows)

    for l in range(num_layers):
        bo = vec_ref[l, 0]
        g1 = vec_ref[l, 1]
        be1 = vec_ref[l, 2]
        g2 = vec_ref[l, 3]
        be2 = vec_ref[l, 4]
        b2 = vec_ref[l, 5]

        # ---- multi-head self attention (post-LN encoder layer) ----
        qkv = jnp.dot(h.astype(MXU_DT), wqkv_ref[l],
                      preferred_element_type=jnp.float32) + bqkv_ref[l]

        attn = bo                                                      # (1, d), broadcasts
        for hh in range(nhead):
            lo = hh * hdim
            q_h = qkv[:, lo:lo + hdim].astype(MXU_DT)
            k_h = qkv[:, d + lo:d + lo + hdim].astype(MXU_DT)
            v_h = qkv[:, 2 * d + lo:2 * d + lo + hdim].astype(MXU_DT)

            s = jnp.einsum('qd,kd->qk', q_h, k_h,
                           preferred_element_type=jnp.float32) * scale + bias
            m = jnp.max(s, axis=-1, keepdims=True)
            p = jnp.exp(s - m)
            p = p * pl.reciprocal(jnp.sum(p, axis=-1, keepdims=True),
                                  approx=True)
            ctx = jnp.dot(p.astype(MXU_DT), v_h,
                          preferred_element_type=jnp.float32)          # (rows, hdim)
            attn = attn + jnp.dot(ctx.astype(MXU_DT), wo_ref[l, hh],
                                  preferred_element_type=jnp.float32)  # (rows, d)

        h = _layernorm(h + attn, g1, be1)

        # ---- feed-forward (ReLU) ----
        ff = jnp.dot(h.astype(MXU_DT), w1_ref[l],
                     preferred_element_type=jnp.float32) + b1_ref[l]
        ff = jnp.maximum(ff, 0.0)
        ff = jnp.dot(ff.astype(MXU_DT), w2_ref[l],
                     preferred_element_type=jnp.float32) + b2

        h = _layernorm(h + ff, g2, be2)

    # last time step of each sequence (exact f32 selection matmul), final linear
    last = jnp.dot(sel_ref[...], h, preferred_element_type=jnp.float32)   # (TB, d)
    out_ref[...] = jnp.dot(last, w_out_ref[...],
                           preferred_element_type=jnp.float32) + b_out_ref[...]


# ------------------------------ wrapper ---------------------------------------
def _choose_tb(B, S, max_rows=512):
    """Pick a batch-block size TB (divides B) so TB*S rows fit nicely."""
    if B * S <= max_rows:
        return B
    cands = [tb for tb in range(1, B + 1)
             if B % tb == 0 and tb * S <= max_rows and (tb * S) % 8 == 0]
    return max(cands) if cands else B


def transformer_forward(src, params, *, nhead=NHEAD, num_layers=NUM_LAYERS):
    B, S, F = src.shape
    d = params['w_in'].shape[1]
    C = params['w_out'].shape[1]

    TB = _choose_tb(B, S)
    rows = TB * S
    nsteps = B // TB

    # ---- host/XLA-side preprocessing (all deterministic, tiny) ----
    x_flat = src.reshape(B * S, F).astype(jnp.float32)
    pe_t = jnp.tile(params['pe'], (TB, 1))                # (rows, d)
    tw_t = jnp.tile(params['tw'], (TB, 1))                # (rows, 1)

    # block-diagonal causal additive mask over the packed rows
    r = np.arange(rows)
    b_idx, s_idx = r // S, r % S
    allowed = (b_idx[:, None] == b_idx[None, :]) & (s_idx[None, :] <= s_idx[:, None])
    mask_bias = jnp.asarray(np.where(allowed, 0.0, -1e9).astype(np.float32))

    # selection matrix: row b picks packed row b*S + (S-1)
    sel_np = np.zeros((TB, rows), np.float32)
    sel_np[np.arange(TB), np.arange(TB) * S + (S - 1)] = 1.0
    sel = jnp.asarray(sel_np)

    # pack small per-layer (1, d) vectors: [bo, g1, be1, g2, be2, b2]
    vecs = jnp.stack([params['bo'], params['g1'], params['be1'],
                      params['g2'], params['be2'], params['b2']], axis=1)  # (L,6,1,d)

    inputs = [
        x_flat, pe_t, tw_t, mask_bias, sel,
        params['w_in'].astype(MXU_DT), params['b_in'],
        params['wqkv'].astype(MXU_DT), params['bqkv'],
        params['wo'].astype(MXU_DT),
        params['w1'].astype(MXU_DT), params['b1'],
        params['w2'].astype(MXU_DT),
        vecs,
        params['w_out'], params['b_out'],
    ]

    def const_spec(a):
        nd = a.ndim
        return pl.BlockSpec(a.shape, lambda i, _nd=nd: (0,) * _nd)

    in_specs = ([pl.BlockSpec((rows, F), lambda i: (i, 0))]
                + [const_spec(a) for a in inputs[1:]])
    out_spec = pl.BlockSpec((TB, C), lambda i: (i, 0))

    kern = functools.partial(transformer_kernel,
                             num_layers=num_layers, nhead=nhead)

    out = pl.pallas_call(
        kern,
        out_shape=jax.ShapeDtypeStruct((B, C), jnp.float32),
        grid_spec=pltpu.PrefetchScalarGridSpec(
            num_scalar_prefetch=0,
            grid=(nsteps,),
            in_specs=in_specs,
            out_specs=out_spec,
        ),
        compiler_params=pltpu.CompilerParams(
            dimension_semantics=("parallel",)),
    )(*inputs)
    return out


# ------------------------ deterministic parameter init ------------------------
def make_positional_encoding(seq_len, d_model):
    pos = np.arange(seq_len, dtype=np.float32)[:, None]
    div = np.exp(np.arange(0, d_model, 2, dtype=np.float32)
                 * (-math.log(10000.0) / d_model))
    pe = np.zeros((seq_len, d_model), dtype=np.float32)
    pe[:, 0::2] = np.sin(pos * div)
    pe[:, 1::2] = np.cos(pos * div)
    return jnp.asarray(pe)


def make_time_decay_weights(seq_len):
    w = np.linspace(0.5, 1.0, seq_len).astype(np.float32)
    w = w / w.max()
    return jnp.asarray(w)[:, None]                                    # (S, 1)


def init_params(key, input_dim, d_model, nhead, num_layers, dff, num_classes,
                seq_len):
    L, d = num_layers, d_model
    hdim = d // nhead

    def nrm(k, shape, scale=0.05):
        return (scale * jax.random.normal(k, shape)).astype(jnp.float32)

    keys = jax.random.split(key, 16)
    p = {
        'pe': make_positional_encoding(seq_len, d),
        'tw': make_time_decay_weights(seq_len),
        'w_in': nrm(keys[0], (input_dim, d)),
        'b_in': nrm(keys[1], (1, d)),
        # fused Q|K|V projection (stored (in, out), i.e. transposed nn.Linear)
        'wqkv': nrm(keys[2], (L, d, 3 * d)),
        'bqkv': nrm(keys[3], (L, 1, 3 * d)),
        # out-proj weight split per head along its input rows
        'wo': nrm(keys[4], (L, nhead, hdim, d)),
        'bo': nrm(keys[5], (L, 1, d)),
        'g1': jnp.ones((L, 1, d), jnp.float32),
        'be1': jnp.zeros((L, 1, d), jnp.float32),
        'g2': jnp.ones((L, 1, d), jnp.float32),
        'be2': jnp.zeros((L, 1, d), jnp.float32),
        'w1': nrm(keys[6], (L, d, dff)), 'b1': nrm(keys[7], (L, 1, dff)),
        'w2': nrm(keys[8], (L, dff, d)), 'b2': nrm(keys[9], (L, 1, d)),
        'w_out': nrm(keys[10], (d, num_classes)),
        'b_out': nrm(keys[11], (1, num_classes)),
    }
    return p


# ----------------------------------- main -------------------------------------
if __name__ == "__main__":
    B = 8
    key = jax.random.PRNGKey(0)
    k_x, k_p = jax.random.split(key)

    src = jax.random.normal(k_x, (B, SEQ_LENGTH, INPUT_DIM), dtype=jnp.float32)
    params = init_params(k_p, INPUT_DIM, D_MODEL, NHEAD, NUM_LAYERS,
                         DIM_FEEDFORWARD, NUM_CLASSES, SEQ_LENGTH)

    logits = transformer_forward(src, params)
    jax.block_until_ready(logits)
    assert logits.shape == (B, NUM_CLASSES)
    # TODO(synk): dropout layers are treated as identity (eval mode); training-mode
    # stochastic dropout is not implemented in the kernel.
    print("KERNEL_OK")
</pallas_src>

<mosaic_0001>
module attributes {stable_mosaic.version = 11 : i64} {
  func.func @transformer_kernel(%arg0: i32, %arg1: memref<40x16xf32, #tpu.memory_space<vmem>>, %arg2: memref<40x32xf32, #tpu.memory_space<vmem>>, %arg3: memref<40x1xf32, #tpu.memory_space<vmem>>, %arg4: memref<40x40xf32, #tpu.memory_space<vmem>>, %arg5: memref<8x40xf32, #tpu.memory_space<vmem>>, %arg6: memref<16x32xbf16, #tpu.memory_space<vmem>>, %arg7: memref<1x32xf32, #tpu.memory_space<vmem>>, %arg8: memref<2x32x96xbf16, #tpu.memory_space<vmem>>, %arg9: memref<2x1x96xf32, #tpu.memory_space<vmem>>, %arg10: memref<2x2x16x32xbf16, #tpu.memory_space<vmem>>, %arg11: memref<2x32x128xbf16, #tpu.memory_space<vmem>>, %arg12: memref<2x1x128xf32, #tpu.memory_space<vmem>>, %arg13: memref<2x128x32xbf16, #tpu.memory_space<vmem>>, %arg14: memref<2x6x1x32xf32, #tpu.memory_space<vmem>>, %arg15: memref<32x3xf32, #tpu.memory_space<vmem>>, %arg16: memref<1x3xf32, #tpu.memory_space<vmem>>, %arg17: memref<8x3xf32, #tpu.memory_space<vmem>>) attributes {dimension_semantics = [#tpu.dimension_semantics<parallel>], iteration_bounds = array<i64: 1>, scalar_prefetch = 0 : i64, scratch_operands = 0 : i64, tpu.core_type = #tpu.core_type<tc>, window_params = [{transform_indices = @transform_0, window_bounds = array<i64: 40, 16>}, {pipeline_mode = #tpu.pipeline_mode<synchronous>, transform_indices = @transform_1, window_bounds = array<i64: 40, 32>}, {pipeline_mode = #tpu.pipeline_mode<synchronous>, transform_indices = @transform_2, window_bounds = array<i64: 40, 1>}, {pipeline_mode = #tpu.pipeline_mode<synchronous>, transform_indices = @transform_3, window_bounds = array<i64: 40, 40>}, {pipeline_mode = #tpu.pipeline_mode<synchronous>, transform_indices = @transform_4, window_bounds = array<i64: 8, 40>}, {pipeline_mode = #tpu.pipeline_mode<synchronous>, transform_indices = @transform_5, window_bounds = array<i64: 16, 32>}, {pipeline_mode = #tpu.pipeline_mode<synchronous>, transform_indices = @transform_6, window_bounds = array<i64: 1, 32>}, {pipeline_mode = #tpu.pipeline_mode<synchronous>, transform_indices = @transform_7, window_bounds = array<i64: 2, 32, 96>}, {pipeline_mode = #tpu.pipeline_mode<synchronous>, transform_indices = @transform_8, window_bounds = array<i64: 2, 1, 96>}, {pipeline_mode = #tpu.pipeline_mode<synchronous>, transform_indices = @transform_9, window_bounds = array<i64: 2, 2, 16, 32>}, {pipeline_mode = #tpu.pipeline_mode<synchronous>, transform_indices = @transform_10, window_bounds = array<i64: 2, 32, 128>}, {pipeline_mode = #tpu.pipeline_mode<synchronous>, transform_indices = @transform_11, window_bounds = array<i64: 2, 1, 128>}, {pipeline_mode = #tpu.pipeline_mode<synchronous>, transform_indices = @transform_12, window_bounds = array<i64: 2, 128, 32>}, {pipeline_mode = #tpu.pipeline_mode<synchronous>, transform_indices = @transform_13, window_bounds = array<i64: 2, 6, 1, 32>}, {pipeline_mode = #tpu.pipeline_mode<synchronous>, transform_indices = @transform_14, window_bounds = array<i64: 32, 3>}, {pipeline_mode = #tpu.pipeline_mode<synchronous>, transform_indices = @transform_15, window_bounds = array<i64: 1, 3>}, {transform_indices = @transform_16, window_bounds = array<i64: 8, 3>}]} {
    %c0 = arith.constant 0 : index
    %c0_0 = arith.constant 0 : index
    %0 = vector.load %arg1[%c0, %c0_0] : memref<40x16xf32, #tpu.memory_space<vmem>>, vector<40x16xf32>
    %1 = arith.truncf %0 : vector<40x16xf32> to vector<40x16xbf16>
    %c0_1 = arith.constant 0 : index
    %c0_2 = arith.constant 0 : index
    %2 = vector.load %arg6[%c0_1, %c0_2] : memref<16x32xbf16, #tpu.memory_space<vmem>>, vector<16x32xbf16>
    %cst = arith.constant dense<0.000000e+00> : vector<40x32xf32>
    %3 = tpu.matmul %1, %2, %cst {dimension_numbers = #tpu.dot_dimension_numbers<[1], [0], [0], [1], [0, 0, 1, 1], [], []>} : vector<40x16xbf16>, vector<16x32xbf16>, vector<40x32xf32> -> vector<40x32xf32>
    %c0_3 = arith.constant 0 : index
    %c0_4 = arith.constant 0 : index
    %4 = vector.load %arg7[%c0_3, %c0_4] : memref<1x32xf32, #tpu.memory_space<vmem>>, vector<1x32xf32>
    %5 = vector.broadcast %4 : vector<1x32xf32> to vector<40x32xf32>
    %6 = arith.addf %3, %5 : vector<40x32xf32>
    %cst_5 = arith.constant 5.65685415 : f32
    %7 = vector.broadcast %cst_5 : f32 to vector<40x32xf32>
    %8 = arith.mulf %6, %7 : vector<40x32xf32>
    %c0_6 = arith.constant 0 : index
    %c0_7 = arith.constant 0 : index
    %9 = vector.load %arg2[%c0_6, %c0_7] : memref<40x32xf32, #tpu.memory_space<vmem>>, vector<40x32xf32>
    %10 = arith.addf %8, %9 : vector<40x32xf32>
    %c0_8 = arith.constant 0 : index
    %c0_9 = arith.constant 0 : index
    %11 = vector.load %arg3[%c0_8, %c0_9] : memref<40x1xf32, #tpu.memory_space<vmem>>, vector<40x1xf32>
    %12 = vector.broadcast %11 : vector<40x1xf32> to vector<40x32xf32>
    %13 = arith.mulf %10, %12 : vector<40x32xf32>
    %c0_10 = arith.constant 0 : index
    %c0_11 = arith.constant 0 : index
    %14 = vector.load %arg4[%c0_10, %c0_11] : memref<40x40xf32, #tpu.memory_space<vmem>>, vector<40x40xf32>
    %c0_12 = arith.constant 0 : index
    %c0_13 = arith.constant 0 : index
    %c0_14 = arith.constant 0 : index
    %c0_15 = arith.constant 0 : index
    %15 = vector.load %arg14[%c0_12, %c0_13, %c0_14, %c0_15] : memref<2x6x1x32xf32, #tpu.memory_space<vmem>>, vector<1x1x1x32xf32>
    %16 = vector.shape_cast %15 : vector<1x1x1x32xf32> to vector<1x32xf32>
    %c0_16 = arith.constant 0 : index
    %c1 = arith.constant 1 : index
    %c0_17 = arith.constant 0 : index
    %c0_18 = arith.constant 0 : index
    %17 = vector.load %arg14[%c0_16, %c1, %c0_17, %c0_18] : memref<2x6x1x32xf32, #tpu.memory_space<vmem>>, vector<1x1x1x32xf32>
    %18 = vector.shape_cast %17 : vector<1x1x1x32xf32> to vector<1x32xf32>
    %c0_19 = arith.constant 0 : index
    %c2 = arith.constant 2 : index
    %c0_20 = arith.constant 0 : index
    %c0_21 = arith.constant 0 : index
    %19 = vector.load %arg14[%c0_19, %c2, %c0_20, %c0_21] : memref<2x6x1x32xf32, #tpu.memory_space<vmem>>, vector<1x1x1x32xf32>
    %20 = vector.shape_cast %19 : vector<1x1x1x32xf32> to vector<1x32xf32>
    %c0_22 = arith.constant 0 : index
    %c3 = arith.constant 3 : index
    %c0_23 = arith.constant 0 : index
    %c0_24 = arith.constant 0 : index
    %21 = vector.load %arg14[%c0_22, %c3, %c0_23, %c0_24] : memref<2x6x1x32xf32, #tpu.memory_space<vmem>>, vector<1x1x1x32xf32>
    %22 = vector.shape_cast %21 : vector<1x1x1x32xf32> to vector<1x32xf32>
    %c0_25 = arith.constant 0 : index
    %c4 = arith.constant 4 : index
    %c0_26 = arith.constant 0 : index
    %c0_27 = arith.constant 0 : index
    %23 = vector.load %arg14[%c0_25, %c4, %c0_26, %c0_27] : memref<2x6x1x32xf32, #tpu.memory_space<vmem>>, vector<1x1x1x32xf32>
    %24 = vector.shape_cast %23 : vector<1x1x1x32xf32> to vector<1x32xf32>
    %c0_28 = arith.constant 0 : index
    %c5 = arith.constant 5 : index
    %c0_29 = arith.constant 0 : index
    %c0_30 = arith.constant 0 : index
    %25 = vector.load %arg14[%c0_28, %c5, %c0_29, %c0_30] : memref<2x6x1x32xf32, #tpu.memory_space<vmem>>, vector<1x1x1x32xf32>
    %26 = vector.shape_cast %25 : vector<1x1x1x32xf32> to vector<1x32xf32>
    %27 = arith.truncf %13 : vector<40x32xf32> to vector<40x32xbf16>
    %c0_31 = arith.constant 0 : index
    %c0_32 = arith.constant 0 : index
    %c0_33 = arith.constant 0 : index
    %28 = vector.load %arg8[%c0_31, %c0_32, %c0_33] : memref<2x32x96xbf16, #tpu.memory_space<vmem>>, vector<1x32x96xbf16>
    %29 = vector.shape_cast %28 : vector<1x32x96xbf16> to vector<32x96xbf16>
    %cst_34 = arith.constant dense<0.000000e+00> : vector<40x96xf32>
    %30 = tpu.matmul %27, %29, %cst_34 {dimension_numbers = #tpu.dot_dimension_numbers<[1], [0], [0], [1], [0, 0, 1, 1], [], []>} : vector<40x32xbf16>, vector<32x96xbf16>, vector<40x96xf32> -> vector<40x96xf32>
    %c0_35 = arith.constant 0 : index
    %c0_36 = arith.constant 0 : index
    %c0_37 = arith.constant 0 : index
    %31 = vector.load %arg9[%c0_35, %c0_36, %c0_37] : memref<2x1x96xf32, #tpu.memory_space<vmem>>, vector<1x1x96xf32>
    %32 = vector.shape_cast %31 : vector<1x1x96xf32> to vector<1x96xf32>
    %33 = vector.broadcast %32 : vector<1x96xf32> to vector<40x96xf32>
    %34 = arith.addf %30, %33 : vector<40x96xf32>
    %35 = vector.extract_strided_slice %34 {offsets = [0, 0], sizes = [40, 16], strides = [1, 1]} : vector<40x96xf32> to vector<40x16xf32>
    %36 = arith.truncf %35 : vector<40x16xf32> to vector<40x16xbf16>
    %37 = vector.extract_strided_slice %34 {offsets = [0, 32], sizes = [40, 16], strides = [1, 1]} : vector<40x96xf32> to vector<40x16xf32>
    %38 = arith.truncf %37 : vector<40x16xf32> to vector<40x16xbf16>
    %39 = vector.extract_strided_slice %34 {offsets = [0, 64], sizes = [40, 16], strides = [1, 1]} : vector<40x96xf32> to vector<40x16xf32>
    %40 = arith.truncf %39 : vector<40x16xf32> to vector<40x16xbf16>
    "tpu.trace_start"() <{level = 10 : i32, message = "qd,kd->qk"}> : () -> ()
    %cst_38 = arith.constant dense<0.000000e+00> : vector<40x40xf32>
    %41 = tpu.matmul %36, %38, %cst_38 {dimension_numbers = #tpu.dot_dimension_numbers<[1], [1], [0], [0], [0, 0, 1, 0], [], []>} : vector<40x16xbf16>, vector<40x16xbf16>, vector<40x40xf32> -> vector<40x40xf32>
    "tpu.trace_stop"() : () -> ()
    %cst_39 = arith.constant 2.500000e-01 : f32
    %42 = vector.broadcast %cst_39 : f32 to vector<40x40xf32>
    %43 = arith.mulf %41, %42 : vector<40x40xf32>
    %44 = arith.addf %43, %14 : vector<40x40xf32>
    %cst_40 = arith.constant dense<0xFF800000> : vector<40xf32>
    %45 = vector.multi_reduction <maximumf>, %44, %cst_40 [1] : vector<40x40xf32> to vector<40xf32>
    %46 = vector.shape_cast %45 : vector<40xf32> to vector<40x1xf32>
    %47 = vector.broadcast %46 : vector<40x1xf32> to vector<40x40xf32>
    %48 = arith.subf %44, %47 : vector<40x40xf32>
    %49 = math.exp %48 : vector<40x40xf32>
    %cst_41 = arith.constant dense<0.000000e+00> : vector<40xf32>
    %50 = vector.multi_reduction <add>, %49, %cst_41 [1] : vector<40x40xf32> to vector<40xf32>
    %51 = vector.shape_cast %50 : vector<40xf32> to vector<40x1xf32>
    %52 = tpu.reciprocal %51 {approx = true} : vector<40x1xf32> -> vector<40x1xf32>
    %53 = vector.broadcast %52 : vector<40x1xf32> to vector<40x40xf32>
    %54 = arith.mulf %49, %53 : vector<40x40xf32>
    %55 = arith.truncf %54 : vector<40x40xf32> to vector<40x40xbf16>
    %cst_42 = arith.constant dense<0.000000e+00> : vector<40x16xf32>
    %56 = tpu.matmul %55, %40, %cst_42 {dimension_numbers = #tpu.dot_dimension_numbers<[1], [0], [0], [1], [0, 0, 1, 1], [], []>} : vector<40x40xbf16>, vector<40x16xbf16>, vector<40x16xf32> -> vector<40x16xf32>
    %57 = arith.truncf %56 : vector<40x16xf32> to vector<40x16xbf16>
    %c0_43 = arith.constant 0 : index
    %c0_44 = arith.constant 0 : index
    %c0_45 = arith.constant 0 : index
    %c0_46 = arith.constant 0 : index
    %58 = vector.load %arg10[%c0_43, %c0_44, %c0_45, %c0_46] : memref<2x2x16x32xbf16, #tpu.memory_space<vmem>>, vector<1x1x16x32xbf16>
    %59 = vector.shape_cast %58 : vector<1x1x16x32xbf16> to vector<16x32xbf16>
    %cst_47 = arith.constant dense<0.000000e+00> : vector<40x32xf32>
    %60 = tpu.matmul %57, %59, %cst_47 {dimension_numbers = #tpu.dot_dimension_numbers<[1], [0], [0], [1], [0, 0, 1, 1], [], []>} : vector<40x16xbf16>, vector<16x32xbf16>, vector<40x32xf32> -> vector<40x32xf32>
    %61 = vector.broadcast %16 : vector<1x32xf32> to vector<40x32xf32>
    %62 = arith.addf %61, %60 : vector<40x32xf32>
    %63 = vector.extract_strided_slice %34 {offsets = [0, 16], sizes = [40, 16], strides = [1, 1]} : vector<40x96xf32> to vector<40x16xf32>
    %64 = arith.truncf %63 : vector<40x16xf32> to vector<40x16xbf16>
    %65 = vector.extract_strided_slice %34 {offsets = [0, 48], sizes = [40, 16], strides = [1, 1]} : vector<40x96xf32> to vector<40x16xf32>
    %66 = arith.truncf %65 : vector<40x16xf32> to vector<40x16xbf16>
    %67 = vector.extract_strided_slice %34 {offsets = [0, 80], sizes = [40, 16], strides = [1, 1]} : vector<40x96xf32> to vector<40x16xf32>
    %68 = arith.truncf %67 : vector<40x16xf32> to vector<40x16xbf16>
    "tpu.trace_start"() <{level = 10 : i32, message = "qd,kd->qk"}> : () -> ()
    %cst_48 = arith.constant dense<0.000000e+00> : vector<40x40xf32>
    %69 = tpu.matmul %64, %66, %cst_48 {dimension_numbers = #tpu.dot_dimension_numbers<[1], [1], [0], [0], [0, 0, 1, 0], [], []>} : vector<40x16xbf16>, vector<40x16xbf16>, vector<40x40xf32> -> vector<40x40xf32>
    "tpu.trace_stop"() : () -> ()
    %cst_49 = arith.constant 2.500000e-01 : f32
    %70 = vector.broadcast %cst_49 : f32 to vector<40x40xf32>
    %71 = arith.mulf %69, %70 : vector<40x40xf32>
    %72 = arith.addf %71, %14 : vector<40x40xf32>
    %cst_50 = arith.constant dense<0xFF800000> : vector<40xf32>
    %73 = vector.multi_reduction <maximumf>, %72, %cst_50 [1] : vector<40x40xf32> to vector<40xf32>
    %74 = vector.shape_cast %73 : vector<40xf32> to vector<40x1xf32>
    %75 = vector.broadcast %74 : vector<40x1xf32> to vector<40x40xf32>
    %76 = arith.subf %72, %75 : vector<40x40xf32>
    %77 = math.exp %76 : vector<40x40xf32>
    %cst_51 = arith.constant dense<0.000000e+00> : vector<40xf32>
    %78 = vector.multi_reduction <add>, %77, %cst_51 [1] : vector<40x40xf32> to vector<40xf32>
    %79 = vector.shape_cast %78 : vector<40xf32> to vector<40x1xf32>
    %80 = tpu.reciprocal %79 {approx = true} : vector<40x1xf32> -> vector<40x1xf32>
    %81 = vector.broadcast %80 : vector<40x1xf32> to vector<40x40xf32>
    %82 = arith.mulf %77, %81 : vector<40x40xf32>
    %83 = arith.truncf %82 : vector<40x40xf32> to vector<40x40xbf16>
    %cst_52 = arith.constant dense<0.000000e+00> : vector<40x16xf32>
    %84 = tpu.matmul %83, %68, %cst_52 {dimension_numbers = #tpu.dot_dimension_numbers<[1], [0], [0], [1], [0, 0, 1, 1], [], []>} : vector<40x40xbf16>, vector<40x16xbf16>, vector<40x16xf32> -> vector<40x16xf32>
    %85 = arith.truncf %84 : vector<40x16xf32> to vector<40x16xbf16>
    %c0_53 = arith.constant 0 : index
    %c1_54 = arith.constant 1 : index
    %c0_55 = arith.constant 0 : index
    %c0_56 = arith.constant 0 : index
    %86 = vector.load %arg10[%c0_53, %c1_54, %c0_55, %c0_56] : memref<2x2x16x32xbf16, #tpu.memory_space<vmem>>, vector<1x1x16x32xbf16>
    %87 = vector.shape_cast %86 : vector<1x1x16x32xbf16> to vector<16x32xbf16>
    %cst_57 = arith.constant dense<0.000000e+00> : vector<40x32xf32>
    %88 = tpu.matmul %85, %87, %cst_57 {dimension_numbers = #tpu.dot_dimension_numbers<[1], [0], [0], [1], [0, 0, 1, 1], [], []>} : vector<40x16xbf16>, vector<16x32xbf16>, vector<40x32xf32> -> vector<40x32xf32>
    %89 = arith.addf %62, %88 : vector<40x32xf32>
    %90 = arith.addf %13, %89 : vector<40x32xf32>
    %cst_58 = arith.constant dense<0.000000e+00> : vector<40xf32>
    %91 = vector.multi_reduction <add>, %90, %cst_58 [1] : vector<40x32xf32> to vector<40xf32>
    %92 = vector.shape_cast %91 : vector<40xf32> to vector<40x1xf32>
    %cst_59 = arith.constant 3.200000e+01 : f32
    %93 = vector.broadcast %cst_59 : f32 to vector<40x1xf32>
    %94 = arith.divf %92, %93 : vector<40x1xf32>
    %95 = vector.broadcast %94 : vector<40x1xf32> to vector<40x32xf32>
    %96 = arith.subf %90, %95 : vector<40x32xf32>
    %97 = arith.mulf %96, %96 : vector<40x32xf32>
    %cst_60 = arith.constant dense<0.000000e+00> : vector<40xf32>
    %98 = vector.multi_reduction <add>, %97, %cst_60 [1] : vector<40x32xf32> to vector<40xf32>
    %99 = vector.shape_cast %98 : vector<40xf32> to vector<40x1xf32>
    %cst_61 = arith.constant 3.200000e+01 : f32
    %100 = vector.broadcast %cst_61 : f32 to vector<40x1xf32>
    %101 = arith.divf %99, %100 : vector<40x1xf32>
    %cst_62 = arith.constant 9.99999974E-6 : f32
    %102 = vector.broadcast %cst_62 : f32 to vector<40x1xf32>
    %103 = arith.addf %101, %102 : vector<40x1xf32>
    %104 = math.rsqrt %103 : vector<40x1xf32>
    %105 = vector.broadcast %104 : vector<40x1xf32> to vector<40x32xf32>
    %106 = arith.mulf %96, %105 : vector<40x32xf32>
    %107 = vector.broadcast %18 : vector<1x32xf32> to vector<40x32xf32>
    %108 = arith.mulf %106, %107 : vector<40x32xf32>
    %109 = vector.broadcast %20 : vector<1x32xf32> to vector<40x32xf32>
    %110 = arith.addf %108, %109 : vector<40x32xf32>
    %111 = arith.truncf %110 : vector<40x32xf32> to vector<40x32xbf16>
    %c0_63 = arith.constant 0 : index
    %c0_64 = arith.constant 0 : index
    %c0_65 = arith.constant 0 : index
    %112 = vector.load %arg11[%c0_63, %c0_64, %c0_65] : memref<2x32x128xbf16, #tpu.memory_space<vmem>>, vector<1x32x128xbf16>
    %113 = vector.shape_cast %112 : vector<1x32x128xbf16> to vector<32x128xbf16>
    %cst_66 = arith.constant dense<0.000000e+00> : vector<40x128xf32>
    %114 = tpu.matmul %111, %113, %cst_66 {dimension_numbers = #tpu.dot_dimension_numbers<[1], [0], [0], [1], [0, 0, 1, 1], [], []>} : vector<40x32xbf16>, vector<32x128xbf16>, vector<40x128xf32> -> vector<40x128xf32>
    %c0_67 = arith.constant 0 : index
    %c0_68 = arith.constant 0 : index
    %c0_69 = arith.constant 0 : index
    %115 = vector.load %arg12[%c0_67, %c0_68, %c0_69] : memref<2x1x128xf32, #tpu.memory_space<vmem>>, vector<1x1x128xf32>
    %116 = vector.shape_cast %115 : vector<1x1x128xf32> to vector<1x128xf32>
    %117 = vector.broadcast %116 : vector<1x128xf32> to vector<40x128xf32>
    %118 = arith.addf %114, %117 : vector<40x128xf32>
    %cst_70 = arith.constant 0.000000e+00 : f32
    %119 = vector.broadcast %cst_70 : f32 to vector<40x128xf32>
    %120 = arith.maximumf %118, %119 : vector<40x128xf32>
    %121 = arith.truncf %120 : vector<40x128xf32> to vector<40x128xbf16>
    %c0_71 = arith.constant 0 : index
    %c0_72 = arith.constant 0 : index
    %c0_73 = arith.constant 0 : index
    %122 = vector.load %arg13[%c0_71, %c0_72, %c0_73] : memref<2x128x32xbf16, #tpu.memory_space<vmem>>, vector<1x128x32xbf16>
    %123 = vector.shape_cast %122 : vector<1x128x32xbf16> to vector<128x32xbf16>
    %cst_74 = arith.constant dense<0.000000e+00> : vector<40x32xf32>
    %124 = tpu.matmul %121, %123, %cst_74 {dimension_numbers = #tpu.dot_dimension_numbers<[1], [0], [0], [1], [0, 0, 1, 1], [], []>} : vector<40x128xbf16>, vector<128x32xbf16>, vector<40x32xf32> -> vector<40x32xf32>
    %125 = vector.broadcast %26 : vector<1x32xf32> to vector<40x32xf32>
    %126 = arith.addf %124, %125 : vector<40x32xf32>
    %127 = arith.addf %110, %126 : vector<40x32xf32>
    %cst_75 = arith.constant dense<0.000000e+00> : vector<40xf32>
    %128 = vector.multi_reduction <add>, %127, %cst_75 [1] : vector<40x32xf32> to vector<40xf32>
    %129 = vector.shape_cast %128 : vector<40xf32> to vector<40x1xf32>
    %cst_76 = arith.constant 3.200000e+01 : f32
    %130 = vector.broadcast %cst_76 : f32 to vector<40x1xf32>
    %131 = arith.divf %129, %130 : vector<40x1xf32>
    %132 = vector.broadcast %131 : vector<40x1xf32> to vector<40x32xf32>
    %133 = arith.subf %127, %132 : vector<40x32xf32>
    %134 = arith.mulf %133, %133 : vector<40x32xf32>
    %cst_77 = arith.constant dense<0.000000e+00> : vector<40xf32>
    %135 = vector.multi_reduction <add>, %134, %cst_77 [1] : vector<40x32xf32> to vector<40xf32>
    %136 = vector.shape_cast %135 : vector<40xf32> to vector<40x1xf32>
    %cst_78 = arith.constant 3.200000e+01 : f32
    %137 = vector.broadcast %cst_78 : f32 to vector<40x1xf32>
    %138 = arith.divf %136, %137 : vector<40x1xf32>
    %cst_79 = arith.constant 9.99999974E-6 : f32
    %139 = vector.broadcast %cst_79 : f32 to vector<40x1xf32>
    %140 = arith.addf %138, %139 : vector<40x1xf32>
    %141 = math.rsqrt %140 : vector<40x1xf32>
    %142 = vector.broadcast %141 : vector<40x1xf32> to vector<40x32xf32>
    %143 = arith.mulf %133, %142 : vector<40x32xf32>
    %144 = vector.broadcast %22 : vector<1x32xf32> to vector<40x32xf32>
    %145 = arith.mulf %143, %144 : vector<40x32xf32>
    %146 = vector.broadcast %24 : vector<1x32xf32> to vector<40x32xf32>
    %147 = arith.addf %145, %146 : vector<40x32xf32>
    %c1_80 = arith.constant 1 : index
    %c0_81 = arith.constant 0 : index
    %c0_82 = arith.constant 0 : index
    %c0_83 = arith.constant 0 : index
    %148 = vector.load %arg14[%c1_80, %c0_81, %c0_82, %c0_83] : memref<2x6x1x32xf32, #tpu.memory_space<vmem>>, vector<1x1x1x32xf32>
    %149 = vector.shape_cast %148 : vector<1x1x1x32xf32> to vector<1x32xf32>
    %c1_84 = arith.constant 1 : index
    %c1_85 = arith.constant 1 : index
    %c0_86 = arith.constant 0 : index
    %c0_87 = arith.constant 0 : index
    %150 = vector.load %arg14[%c1_84, %c1_85, %c0_86, %c0_87] : memref<2x6x1x32xf32, #tpu.memory_space<vmem>>, vector<1x1x1x32xf32>
    %151 = vector.shape_cast %150 : vector<1x1x1x32xf32> to vector<1x32xf32>
    %c1_88 = arith.constant 1 : index
    %c2_89 = arith.constant 2 : index
    %c0_90 = arith.constant 0 : index
    %c0_91 = arith.constant 0 : index
    %152 = vector.load %arg14[%c1_88, %c2_89, %c0_90, %c0_91] : memref<2x6x1x32xf32, #tpu.memory_space<vmem>>, vector<1x1x1x32xf32>
    %153 = vector.shape_cast %152 : vector<1x1x1x32xf32> to vector<1x32xf32>
    %c1_92 = arith.constant 1 : index
    %c3_93 = arith.constant 3 : index
    %c0_94 = arith.constant 0 : index
    %c0_95 = arith.constant 0 : index
    %154 = vector.load %arg14[%c1_92, %c3_93, %c0_94, %c0_95] : memref<2x6x1x32xf32, #tpu.memory_space<vmem>>, vector<1x1x1x32xf32>
    %155 = vector.shape_cast %154 : vector<1x1x1x32xf32> to vector<1x32xf32>
    %c1_96 = arith.constant 1 : index
    %c4_97 = arith.constant 4 : index
    %c0_98 = arith.constant 0 : index
    %c0_99 = arith.constant 0 : index
    %156 = vector.load %arg14[%c1_96, %c4_97, %c0_98, %c0_99] : memref<2x6x1x32xf32, #tpu.memory_space<vmem>>, vector<1x1x1x32xf32>
    %157 = vector.shape_cast %156 : vector<1x1x1x32xf32> to vector<1x32xf32>
    %c1_100 = arith.constant 1 : index
    %c5_101 = arith.constant 5 : index
    %c0_102 = arith.constant 0 : index
    %c0_103 = arith.constant 0 : index
    %158 = vector.load %arg14[%c1_100, %c5_101, %c0_102, %c0_103] : memref<2x6x1x32xf32, #tpu.memory_space<vmem>>, vector<1x1x1x32xf32>
    %159 = vector.shape_cast %158 : vector<1x1x1x32xf32> to vector<1x32xf32>
    %160 = arith.truncf %147 : vector<40x32xf32> to vector<40x32xbf16>
    %c1_104 = arith.constant 1 : index
    %c0_105 = arith.constant 0 : index
    %c0_106 = arith.constant 0 : index
    %161 = vector.load %arg8[%c1_104, %c0_105, %c0_106] : memref<2x32x96xbf16, #tpu.memory_space<vmem>>, vector<1x32x96xbf16>
    %162 = vector.shape_cast %161 : vector<1x32x96xbf16> to vector<32x96xbf16>
    %cst_107 = arith.constant dense<0.000000e+00> : vector<40x96xf32>
    %163 = tpu.matmul %160, %162, %cst_107 {dimension_numbers = #tpu.dot_dimension_numbers<[1], [0], [0], [1], [0, 0, 1, 1], [], []>} : vector<40x32xbf16>, vector<32x96xbf16>, vector<40x96xf32> -> vector<40x96xf32>
    %c1_108 = arith.constant 1 : index
    %c0_109 = arith.constant 0 : index
    %c0_110 = arith.constant 0 : index
    %164 = vector.load %arg9[%c1_108, %c0_109, %c0_110] : memref<2x1x96xf32, #tpu.memory_space<vmem>>, vector<1x1x96xf32>
    %165 = vector.shape_cast %164 : vector<1x1x96xf32> to vector<1x96xf32>
    %166 = vector.broadcast %165 : vector<1x96xf32> to vector<40x96xf32>
    %167 = arith.addf %163, %166 : vector<40x96xf32>
    %168 = vector.extract_strided_slice %167 {offsets = [0, 0], sizes = [40, 16], strides = [1, 1]} : vector<40x96xf32> to vector<40x16xf32>
    %169 = arith.truncf %168 : vector<40x16xf32> to vector<40x16xbf16>
    %170 = vector.extract_strided_slice %167 {offsets = [0, 32], sizes = [40, 16], strides = [1, 1]} : vector<40x96xf32> to vector<40x16xf32>
    %171 = arith.truncf %170 : vector<40x16xf32> to vector<40x16xbf16>
    %172 = vector.extract_strided_slice %167 {offsets = [0, 64], sizes = [40, 16], strides = [1, 1]} : vector<40x96xf32> to vector<40x16xf32>
    %173 = arith.truncf %172 : vector<40x16xf32> to vector<40x16xbf16>
    "tpu.trace_start"() <{level = 10 : i32, message = "qd,kd->qk"}> : () -> ()
    %cst_111 = arith.constant dense<0.000000e+00> : vector<40x40xf32>
    %174 = tpu.matmul %169, %171, %cst_111 {dimension_numbers = #tpu.dot_dimension_numbers<[1], [1], [0], [0], [0, 0, 1, 0], [], []>} : vector<40x16xbf16>, vector<40x16xbf16>, vector<40x40xf32> -> vector<40x40xf32>
    "tpu.trace_stop"() : () -> ()
    %cst_112 = arith.constant 2.500000e-01 : f32
    %175 = vector.broadcast %cst_112 : f32 to vector<40x40xf32>
    %176 = arith.mulf %174, %175 : vector<40x40xf32>
    %177 = arith.addf %176, %14 : vector<40x40xf32>
    %cst_113 = arith.constant dense<0xFF800000> : vector<40xf32>
    %178 = vector.multi_reduction <maximumf>, %177, %cst_113 [1] : vector<40x40xf32> to vector<40xf32>
    %179 = vector.shape_cast %178 : vector<40xf32> to vector<40x1xf32>
    %180 = vector.broadcast %179 : vector<40x1xf32> to vector<40x40xf32>
    %181 = arith.subf %177, %180 : vector<40x40xf32>
    %182 = math.exp %181 : vector<40x40xf32>
    %cst_114 = arith.constant dense<0.000000e+00> : vector<40xf32>
    %183 = vector.multi_reduction <add>, %182, %cst_114 [1] : vector<40x40xf32> to vector<40xf32>
    %184 = vector.shape_cast %183 : vector<40xf32> to vector<40x1xf32>
    %185 = tpu.reciprocal %184 {approx = true} : vector<40x1xf32> -> vector<40x1xf32>
    %186 = vector.broadcast %185 : vector<40x1xf32> to vector<40x40xf32>
    %187 = arith.mulf %182, %186 : vector<40x40xf32>
    %188 = arith.truncf %187 : vector<40x40xf32> to vector<40x40xbf16>
    %cst_115 = arith.constant dense<0.000000e+00> : vector<40x16xf32>
    %189 = tpu.matmul %188, %173, %cst_115 {dimension_numbers = #tpu.dot_dimension_numbers<[1], [0], [0], [1], [0, 0, 1, 1], [], []>} : vector<40x40xbf16>, vector<40x16xbf16>, vector<40x16xf32> -> vector<40x16xf32>
    %190 = arith.truncf %189 : vector<40x16xf32> to vector<40x16xbf16>
    %c1_116 = arith.constant 1 : index
    %c0_117 = arith.constant 0 : index
    %c0_118 = arith.constant 0 : index
    %c0_119 = arith.constant 0 : index
    %191 = vector.load %arg10[%c1_116, %c0_117, %c0_118, %c0_119] : memref<2x2x16x32xbf16, #tpu.memory_space<vmem>>, vector<1x1x16x32xbf16>
    %192 = vector.shape_cast %191 : vector<1x1x16x32xbf16> to vector<16x32xbf16>
    %cst_120 = arith.constant dense<0.000000e+00> : vector<40x32xf32>
    %193 = tpu.matmul %190, %192, %cst_120 {dimension_numbers = #tpu.dot_dimension_numbers<[1], [0], [0], [1], [0, 0, 1, 1], [], []>} : vector<40x16xbf16>, vector<16x32xbf16>, vector<40x32xf32> -> vector<40x32xf32>
    %194 = vector.broadcast %149 : vector<1x32xf32> to vector<40x32xf32>
    %195 = arith.addf %194, %193 : vector<40x32xf32>
    %196 = vector.extract_strided_slice %167 {offsets = [0, 16], sizes = [40, 16], strides = [1, 1]} : vector<40x96xf32> to vector<40x16xf32>
    %197 = arith.truncf %196 : vector<40x16xf32> to vector<40x16xbf16>
    %198 = vector.extract_strided_slice %167 {offsets = [0, 48], sizes = [40, 16], strides = [1, 1]} : vector<40x96xf32> to vector<40x16xf32>
    %199 = arith.truncf %198 : vector<40x16xf32> to vector<40x16xbf16>
    %200 = vector.extract_strided_slice %167 {offsets = [0, 80], sizes = [40, 16], strides = [1, 1]} : vector<40x96xf32> to vector<40x16xf32>
    %201 = arith.truncf %200 : vector<40x16xf32> to vector<40x16xbf16>
    "tpu.trace_start"() <{level = 10 : i32, message = "qd,kd->qk"}> : () -> ()
    %cst_121 = arith.constant dense<0.000000e+00> : vector<40x40xf32>
    %202 = tpu.matmul %197, %199, %cst_121 {dimension_numbers = #tpu.dot_dimension_numbers<[1], [1], [0], [0], [0, 0, 1, 0], [], []>} : vector<40x16xbf16>, vector<40x16xbf16>, vector<40x40xf32> -> vector<40x40xf32>
    "tpu.trace_stop"() : () -> ()
    %cst_122 = arith.constant 2.500000e-01 : f32
    %203 = vector.broadcast %cst_122 : f32 to vector<40x40xf32>
    %204 = arith.mulf %202, %203 : vector<40x40xf32>
    %205 = arith.addf %204, %14 : vector<40x40xf32>
    %cst_123 = arith.constant dense<0xFF800000> : vector<40xf32>
    %206 = vector.multi_reduction <maximumf>, %205, %cst_123 [1] : vector<40x40xf32> to vector<40xf32>
    %207 = vector.shape_cast %206 : vector<40xf32> to vector<40x1xf32>
    %208 = vector.broadcast %207 : vector<40x1xf32> to vector<40x40xf32>
    %209 = arith.subf %205, %208 : vector<40x40xf32>
    %210 = math.exp %209 : vector<40x40xf32>
    %cst_124 = arith.constant dense<0.000000e+00> : vector<40xf32>
    %211 = vector.multi_reduction <add>, %210, %cst_124 [1] : vector<40x40xf32> to vector<40xf32>
    %212 = vector.shape_cast %211 : vector<40xf32> to vector<40x1xf32>
    %213 = tpu.reciprocal %212 {approx = true} : vector<40x1xf32> -> vector<40x1xf32>
    %214 = vector.broadcast %213 : vector<40x1xf32> to vector<40x40xf32>
    %215 = arith.mulf %210, %214 : vector<40x40xf32>
    %216 = arith.truncf %215 : vector<40x40xf32> to vector<40x40xbf16>
    %cst_125 = arith.constant dense<0.000000e+00> : vector<40x16xf32>
    %217 = tpu.matmul %216, %201, %cst_125 {dimension_numbers = #tpu.dot_dimension_numbers<[1], [0], [0], [1], [0, 0, 1, 1], [], []>} : vector<40x40xbf16>, vector<40x16xbf16>, vector<40x16xf32> -> vector<40x16xf32>
    %218 = arith.truncf %217 : vector<40x16xf32> to vector<40x16xbf16>
    %c1_126 = arith.constant 1 : index
    %c1_127 = arith.constant 1 : index
    %c0_128 = arith.constant 0 : index
    %c0_129 = arith.constant 0 : index
    %219 = vector.load %arg10[%c1_126, %c1_127, %c0_128, %c0_129] : memref<2x2x16x32xbf16, #tpu.memory_space<vmem>>, vector<1x1x16x32xbf16>
    %220 = vector.shape_cast %219 : vector<1x1x16x32xbf16> to vector<16x32xbf16>
    %cst_130 = arith.constant dense<0.000000e+00> : vector<40x32xf32>
    %221 = tpu.matmul %218, %220, %cst_130 {dimension_numbers = #tpu.dot_dimension_numbers<[1], [0], [0], [1], [0, 0, 1, 1], [], []>} : vector<40x16xbf16>, vector<16x32xbf16>, vector<40x32xf32> -> vector<40x32xf32>
    %222 = arith.addf %195, %221 : vector<40x32xf32>
    %223 = arith.addf %147, %222 : vector<40x32xf32>
    %cst_131 = arith.constant dense<0.000000e+00> : vector<40xf32>
    %224 = vector.multi_reduction <add>, %223, %cst_131 [1] : vector<40x32xf32> to vector<40xf32>
    %225 = vector.shape_cast %224 : vector<40xf32> to vector<40x1xf32>
    %cst_132 = arith.constant 3.200000e+01 : f32
    %226 = vector.broadcast %cst_132 : f32 to vector<40x1xf32>
    %227 = arith.divf %225, %226 : vector<40x1xf32>
    %228 = vector.broadcast %227 : vector<40x1xf32> to vector<40x32xf32>
    %229 = arith.subf %223, %228 : vector<40x32xf32>
    %230 = arith.mulf %229, %229 : vector<40x32xf32>
    %cst_133 = arith.constant dense<0.000000e+00> : vector<40xf32>
    %231 = vector.multi_reduction <add>, %230, %cst_133 [1] : vector<40x32xf32> to vector<40xf32>
    %232 = vector.shape_cast %231 : vector<40xf32> to vector<40x1xf32>
    %cst_134 = arith.constant 3.200000e+01 : f32
    %233 = vector.broadcast %cst_134 : f32 to vector<40x1xf32>
    %234 = arith.divf %232, %233 : vector<40x1xf32>
    %cst_135 = arith.constant 9.99999974E-6 : f32
    %235 = vector.broadcast %cst_135 : f32 to vector<40x1xf32>
    %236 = arith.addf %234, %235 : vector<40x1xf32>
    %237 = math.rsqrt %236 : vector<40x1xf32>
    %238 = vector.broadcast %237 : vector<40x1xf32> to vector<40x32xf32>
    %239 = arith.mulf %229, %238 : vector<40x32xf32>
    %240 = vector.broadcast %151 : vector<1x32xf32> to vector<40x32xf32>
    %241 = arith.mulf %239, %240 : vector<40x32xf32>
    %242 = vector.broadcast %153 : vector<1x32xf32> to vector<40x32xf32>
    %243 = arith.addf %241, %242 : vector<40x32xf32>
    %244 = arith.truncf %243 : vector<40x32xf32> to vector<40x32xbf16>
    %c1_136 = arith.constant 1 : index
    %c0_137 = arith.constant 0 : index
    %c0_138 = arith.constant 0 : index
    %245 = vector.load %arg11[%c1_136, %c0_137, %c0_138] : memref<2x32x128xbf16, #tpu.memory_space<vmem>>, vector<1x32x128xbf16>
    %246 = vector.shape_cast %245 : vector<1x32x128xbf16> to vector<32x128xbf16>
    %cst_139 = arith.constant dense<0.000000e+00> : vector<40x128xf32>
    %247 = tpu.matmul %244, %246, %cst_139 {dimension_numbers = #tpu.dot_dimension_numbers<[1], [0], [0], [1], [0, 0, 1, 1], [], []>} : vector<40x32xbf16>, vector<32x128xbf16>, vector<40x128xf32> -> vector<40x128xf32>
    %c1_140 = arith.constant 1 : index
    %c0_141 = arith.constant 0 : index
    %c0_142 = arith.constant 0 : index
    %248 = vector.load %arg12[%c1_140, %c0_141, %c0_142] : memref<2x1x128xf32, #tpu.memory_space<vmem>>, vector<1x1x128xf32>
    %249 = vector.shape_cast %248 : vector<1x1x128xf32> to vector<1x128xf32>
    %250 = vector.broadcast %249 : vector<1x128xf32> to vector<40x128xf32>
    %251 = arith.addf %247, %250 : vector<40x128xf32>
    %cst_143 = arith.constant 0.000000e+00 : f32
    %252 = vector.broadcast %cst_143 : f32 to vector<40x128xf32>
    %253 = arith.maximumf %251, %252 : vector<40x128xf32>
    %254 = arith.truncf %253 : vector<40x128xf32> to vector<40x128xbf16>
    %c1_144 = arith.constant 1 : index
    %c0_145 = arith.constant 0 : index
    %c0_146 = arith.constant 0 : index
    %255 = vector.load %arg13[%c1_144, %c0_145, %c0_146] : memref<2x128x32xbf16, #tpu.memory_space<vmem>>, vector<1x128x32xbf16>
    %256 = vector.shape_cast %255 : vector<1x128x32xbf16> to vector<128x32xbf16>
    %cst_147 = arith.constant dense<0.000000e+00> : vector<40x32xf32>
    %257 = tpu.matmul %254, %256, %cst_147 {dimension_numbers = #tpu.dot_dimension_numbers<[1], [0], [0], [1], [0, 0, 1, 1], [], []>} : vector<40x128xbf16>, vector<128x32xbf16>, vector<40x32xf32> -> vector<40x32xf32>
    %258 = vector.broadcast %159 : vector<1x32xf32> to vector<40x32xf32>
    %259 = arith.addf %257, %258 : vector<40x32xf32>
    %260 = arith.addf %243, %259 : vector<40x32xf32>
    %cst_148 = arith.constant dense<0.000000e+00> : vector<40xf32>
    %261 = vector.multi_reduction <add>, %260, %cst_148 [1] : vector<40x32xf32> to vector<40xf32>
    %262 = vector.shape_cast %261 : vector<40xf32> to vector<40x1xf32>
    %cst_149 = arith.constant 3.200000e+01 : f32
    %263 = vector.broadcast %cst_149 : f32 to vector<40x1xf32>
    %264 = arith.divf %262, %263 : vector<40x1xf32>
    %265 = vector.broadcast %264 : vector<40x1xf32> to vector<40x32xf32>
    %266 = arith.subf %260, %265 : vector<40x32xf32>
    %267 = arith.mulf %266, %266 : vector<40x32xf32>
    %cst_150 = arith.constant dense<0.000000e+00> : vector<40xf32>
    %268 = vector.multi_reduction <add>, %267, %cst_150 [1] : vector<40x32xf32> to vector<40xf32>
    %269 = vector.shape_cast %268 : vector<40xf32> to vector<40x1xf32>
    %cst_151 = arith.constant 3.200000e+01 : f32
    %270 = vector.broadcast %cst_151 : f32 to vector<40x1xf32>
    %271 = arith.divf %269, %270 : vector<40x1xf32>
    %cst_152 = arith.constant 9.99999974E-6 : f32
    %272 = vector.broadcast %cst_152 : f32 to vector<40x1xf32>
    %273 = arith.addf %271, %272 : vector<40x1xf32>
    %274 = math.rsqrt %273 : vector<40x1xf32>
    %275 = vector.broadcast %274 : vector<40x1xf32> to vector<40x32xf32>
    %276 = arith.mulf %266, %275 : vector<40x32xf32>
    %277 = vector.broadcast %155 : vector<1x32xf32> to vector<40x32xf32>
    %278 = arith.mulf %276, %277 : vector<40x32xf32>
    %279 = vector.broadcast %157 : vector<1x32xf32> to vector<40x32xf32>
    %280 = arith.addf %278, %279 : vector<40x32xf32>
    %c0_153 = arith.constant 0 : index
    %c0_154 = arith.constant 0 : index
    %281 = vector.load %arg5[%c0_153, %c0_154] : memref<8x40xf32, #tpu.memory_space<vmem>>, vector<8x40xf32>
    %cst_155 = arith.constant dense<0.000000e+00> : vector<8x32xf32>
    %282 = tpu.matmul %281, %280, %cst_155 {dimension_numbers = #tpu.dot_dimension_numbers<[1], [0], [0], [1], [0, 0, 1, 1], [], []>} : vector<8x40xf32>, vector<40x32xf32>, vector<8x32xf32> -> vector<8x32xf32>
    %c0_156 = arith.constant 0 : index
    %c0_157 = arith.constant 0 : index
    %283 = vector.load %arg15[%c0_156, %c0_157] : memref<32x3xf32, #tpu.memory_space<vmem>>, vector<32x3xf32>
    %cst_158 = arith.constant dense<0.000000e+00> : vector<8x3xf32>
    %284 = tpu.matmul %282, %283, %cst_158 {dimension_numbers = #tpu.dot_dimension_numbers<[1], [0], [0], [1], [0, 0, 1, 1], [], []>} : vector<8x32xf32>, vector<32x3xf32>, vector<8x3xf32> -> vector<8x3xf32>
    %c0_159 = arith.constant 0 : index
    %c0_160 = arith.constant 0 : index
    %285 = vector.load %arg16[%c0_159, %c0_160] : memref<1x3xf32, #tpu.memory_space<vmem>>, vector<1x3xf32>
    %286 = vector.broadcast %285 : vector<1x3xf32> to vector<8x3xf32>
    %287 = arith.addf %284, %286 : vector<8x3xf32>
    %c0_161 = arith.constant 0 : index
    %c0_162 = arith.constant 0 : index
    %288 = vector.load %arg17[%c0_161, %c0_162] : memref<8x3xf32, #tpu.memory_space<vmem>>, vector<8x3xf32>
    tpu.vector_store %arg17[%c0_161, %c0_162], %287 {strides = array<i32>} : memref<8x3xf32, #tpu.memory_space<vmem>>, vector<8x3xf32>,
    return
  }
  func.func @transform_0(%arg0: i32) -> (i32, i32) {
    %c0_i32 = arith.constant 0 : i32
    %c0_i32_0 = arith.constant 0 : i32
    return %arg0, %c0_i32 : i32, i32
  }
  func.func @transform_1(%arg0: i32) -> (i32, i32) {
    %c0_i32 = arith.constant 0 : i32
    %c0_i32_0 = arith.constant 0 : i32
    %c0_i32_1 = arith.constant 0 : i32
    return %c0_i32, %c0_i32_0 : i32, i32
  }
  func.func @transform_2(%arg0: i32) -> (i32, i32) {
    %c0_i32 = arith.constant 0 : i32
    %c0_i32_0 = arith.constant 0 : i32
    %c0_i32_1 = arith.constant 0 : i32
    return %c0_i32, %c0_i32_0 : i32, i32
  }
  func.func @transform_3(%arg0: i32) -> (i32, i32) {
    %c0_i32 = arith.constant 0 : i32
    %c0_i32_0 = arith.constant 0 : i32
    %c0_i32_1 = arith.constant 0 : i32
    return %c0_i32, %c0_i32_0 : i32, i32
  }
  func.func @transform_4(%arg0: i32) -> (i32, i32) {
    %c0_i32 = arith.constant 0 : i32
    %c0_i32_0 = arith.constant 0 : i32
    %c0_i32_1 = arith.constant 0 : i32
    return %c0_i32, %c0_i32_0 : i32, i32
  }
  func.func @transform_5(%arg0: i32) -> (i32, i32) {
    %c0_i32 = arith.constant 0 : i32
    %c0_i32_0 = arith.constant 0 : i32
    %c0_i32_1 = arith.constant 0 : i32
    return %c0_i32, %c0_i32_0 : i32, i32
  }
  func.func @transform_6(%arg0: i32) -> (i32, i32) {
    %c0_i32 = arith.constant 0 : i32
    %c0_i32_0 = arith.constant 0 : i32
    %c0_i32_1 = arith.constant 0 : i32
    return %c0_i32, %c0_i32_0 : i32, i32
  }
  func.func @transform_7(%arg0: i32) -> (i32, i32, i32) {
    %c0_i32 = arith.constant 0 : i32
    %c0_i32_0 = arith.constant 0 : i32
    %c0_i32_1 = arith.constant 0 : i32
    %c0_i32_2 = arith.constant 0 : i32
    return %c0_i32, %c0_i32_0, %c0_i32_1 : i32, i32, i32
  }
  func.func @transform_8(%arg0: i32) -> (i32, i32, i32) {
    %c0_i32 = arith.constant 0 : i32
    %c0_i32_0 = arith.constant 0 : i32
    %c0_i32_1 = arith.constant 0 : i32
    %c0_i32_2 = arith.constant 0 : i32
    return %c0_i32, %c0_i32_0, %c0_i32_1 : i32, i32, i32
  }
  func.func @transform_9(%arg0: i32) -> (i32, i32, i32, i32) {
    %c0_i32 = arith.constant 0 : i32
    %c0_i32_0 = arith.constant 0 : i32
    %c0_i32_1 = arith.constant 0 : i32
    %c0_i32_2 = arith.constant 0 : i32
    %c0_i32_3 = arith.constant 0 : i32
    return %c0_i32, %c0_i32_0, %c0_i32_1, %c0_i32_2 : i32, i32, i32, i32
  }
  func.func @transform_10(%arg0: i32) -> (i32, i32, i32) {
    %c0_i32 = arith.constant 0 : i32
    %c0_i32_0 = arith.constant 0 : i32
    %c0_i32_1 = arith.constant 0 : i32
    %c0_i32_2 = arith.constant 0 : i32
    return %c0_i32, %c0_i32_0, %c0_i32_1 : i32, i32, i32
  }
  func.func @transform_11(%arg0: i32) -> (i32, i32, i32) {
    %c0_i32 = arith.constant 0 : i32
    %c0_i32_0 = arith.constant 0 : i32
    %c0_i32_1 = arith.constant 0 : i32
    %c0_i32_2 = arith.constant 0 : i32
    return %c0_i32, %c0_i32_0, %c0_i32_1 : i32, i32, i32
  }
  func.func @transform_12(%arg0: i32) -> (i32, i32, i32) {
    %c0_i32 = arith.constant 0 : i32
    %c0_i32_0 = arith.constant 0 : i32
    %c0_i32_1 = arith.constant 0 : i32
    %c0_i32_2 = arith.constant 0 : i32
    return %c0_i32, %c0_i32_0, %c0_i32_1 : i32, i32, i32
  }
  func.func @transform_13(%arg0: i32) -> (i32, i32, i32, i32) {
    %c0_i32 = arith.constant 0 : i32
    %c0_i32_0 = arith.constant 0 : i32
    %c0_i32_1 = arith.constant 0 : i32
    %c0_i32_2 = arith.constant 0 : i32
    %c0_i32_3 = arith.constant 0 : i32
    return %c0_i32, %c0_i32_0, %c0_i32_1, %c0_i32_2 : i32, i32, i32, i32
  }
  func.func @transform_14(%arg0: i32) -> (i32, i32) {
    %c0_i32 = arith.constant 0 : i32
    %c0_i32_0 = arith.constant 0 : i32
    %c0_i32_1 = arith.constant 0 : i32
    return %c0_i32, %c0_i32_0 : i32, i32
  }
  func.func @transform_15(%arg0: i32) -> (i32, i32) {
    %c0_i32 = arith.constant 0 : i32
    %c0_i32_0 = arith.constant 0 : i32
    %c0_i32_1 = arith.constant 0 : i32
    return %c0_i32, %c0_i32_0 : i32, i32
  }
  func.func @transform_16(%arg0: i32) -> (i32, i32) {
    %c0_i32 = arith.constant 0 : i32
    %c0_i32_0 = arith.constant 0 : i32
    return %arg0, %c0_i32 : i32, i32
  }
}

</mosaic_0001>

<bundles_post_ra>
// kernel: tpu_custom_call.1
= control target key start
LH: loop header
LB: loop body
LE: loop exit
PB: predicated region body
PF: predicated region fallthrough
CT: control target
= control target key end

     0   :  { %v2457_v3 = vmov 0   ;;  %vm74_vm0 = vcmask 130048   ;;  %vm196_vm1 = vcmask 261120   ;;  %s2460_s29 = smov 112   ;;  %vm292_vm2 = vcmask 326656   ;;  %s2462_s24 = smov 48   ;;  %s3311_s5 = inlined_call_operand.vmem [shape: bf16[16,32], index: 5, kind: input, shape index: {}]   ;;  %s3312_s0 = inlined_call_operand.vmem [shape: f32[40,16], index: 0, kind: input, shape index: {}]   ;;  %s3313_s2 = inlined_call_operand.vmem [shape: f32[40,1], index: 2, kind: input, shape index: {}]   ;;  %s3314_s6 = inlined_call_operand.vmem [shape: f32[1,32], index: 6, kind: input, shape index: {}]   ;;  %s3315_s8 = inlined_call_operand.vmem [shape: f32[2,1,96], index: 8, kind: input, shape index: {}]   ;;  %s3316_s7 = inlined_call_operand.vmem [shape: bf16[2,32,96], index: 7, kind: input, shape index: {}]   ;;  %s3317_s1 = inlined_call_operand.vmem [shape: f32[40,32], index: 1, kind: input, shape index: {}]   ;;  %s3318_s3 = inlined_call_operand.vmem [shape: f32[40,40], index: 3, kind: input, shape index: {}]   ;;  %s3319_s9 = inlined_call_operand.vmem [shape: bf16[2,2,16,32], index: 9, kind: input, shape index: {}]   ;;  %s3320_s13 = inlined_call_operand.vmem [shape: f32[2,6,1,32], index: 13, kind: input, shape index: {}]   ;;  %s3321_s10 = inlined_call_operand.vmem [shape: bf16[2,32,128], index: 10, kind: input, shape index: {}]   ;;  %s3322_s12 = inlined_call_operand.vmem [shape: bf16[2,128,32], index: 12, kind: input, shape index: {}]   ;;  %s3323_s11 = inlined_call_operand.vmem [shape: f32[2,1,128], index: 11, kind: input, shape index: {}]   ;;  %s3324_s4 = inlined_call_operand.vmem [shape: f32[8,40], index: 4, kind: input, shape index: {}]   ;;  %s3325_s14 = inlined_call_operand.vmem [shape: f32[32,3], index: 14, kind: input, shape index: {}]   ;;  %s3326_s15 = inlined_call_operand.vmem [shape: f32[1,3], index: 15, kind: input, shape index: {}]   ;;  %s3327_s16 = inlined_call_operand.vmem [shape: f32[8,3], index: 16, kind: output, shape index: {}]  }
   0x1   :  { %3328 = sst [smem:[#allocation2_spill]] %s3311_s5  ;;  %v54_v1 = vld [vmem:[%s3312_s0] sm:$0xff]  ;;  %v55_v2 = vld [vmem:[%s3312_s0 + $0x8] sm:$0xff]  ;;  %2309 = vset.pattern.permute.xlu0 %v2457_v3  ;;  %2310 = vset.pattern.permute.xlu1 %v2457_v3  ;;  %v124_v6 = vld [vmem:[%s3313_s2 + $0x10] sm:$0xff]  ;;  %vm368_vm3 = vcmask 1043456  }
   0x2   :  { %s3329_s23 = sld [smem:[#allocation2_spill]]  ;;  %v59_v4 = vpack.c.bf16 %v55_v2, %v54_v1  ;;  %v122_v5 = vld [vmem:[%s3313_s2] sm:$0xff]  ;;  %2311 = vset.pattern.permute.xlu2 %v2457_v3  ;;  %139 = vperm.xlu1 %2310, %v124_v6   ;;  %v123_v8 = vld [vmem:[%s3313_s2 + $0x8] sm:$0xff]  ;;  %v125_v9 = vld [vmem:[%s3313_s2 + $0x18] sm:$0xff] }
   0x3   :  { %129 = vperm.xlu0 %2309, %v122_v5   ;;  %v126_v7 = vld [vmem:[%s3313_s2 + $0x20] sm:$0xff]  ;;  %v56_v10 = vld [vmem:[%s3312_s0 + $0x10] sm:$0xff]  ;;  %v57_v11 = vld [vmem:[%s3312_s0 + $0x18] sm:$0xff]  ;;  %s2459_s2 = smov 80  }
   0x4   :  { %149 = vperm.xlu2 %2311, %v126_v7   ;;  %v60_v12 = vpack.c.bf16 %v57_v11, %v56_v10  ;;  %v58_v13 = vld [vmem:[%s3312_s0 + $0x20] sm:$0xff]  ;;  %v2272_v15 = vld [vmem:[%s3316_s7 + $0x8] sm:$0xff]  ;;  %v114_v37 = vld [vmem:[%s3317_s1 + $0x10] sm:$0xff] }
   0x5   :  { %v61_v14 = vpack.c.bf16 %v58_v13, %v58_v13  ;;  %212 = vmatpush.bf16.msra.mxu1 %v2272_v15  ;;  %v2271_v16 = vld [vmem:[%s3316_s7] sm:$0xff]  ;;  %v113_v25 = vld [vmem:[%s3317_s1 + $0x8] sm:$0xff]  ;;  %v115_v40 = vld [vmem:[%s3317_s1 + $0x18] sm:$0xff] }
   0x6   :  { %v2312_v17 = vld [vmem:[%s3314_s6] ss:$0 sm:$0xff]  ;;  %s2461_s6 = smov 64  }
   0x7   :  { %v112_v22 = vld [vmem:[%s3317_s1] sm:$0xff] }
   0x8   :  { %v2270_v0 = vld [vmem:[%s3329_s23] sm:$0xff] }
   0x9   :  { %91 = vmatpush.bf16.msra.mxu0 %v2270_v0  ;;  %213 = vmatpush.bf16.msra.mxu1 %v2271_v16  ;;  %v116_v51 = vld [vmem:[%s3317_s1 + $0x20] sm:$0xff]  ;;  %s2458_s1 = smov 96  }
   0xa   :  { %144 = vperm.xlu1 %2310, %v125_v9   ;;  %v2313_v58 = vld [vmem:[%s3315_s8] ss:$0 sm:$0xff] }
   0xb   :  { %134 = vperm.xlu0 %2309, %v123_v8  }
   0xc   :  { %2062 = vmatmul.msk.bf16.vlgmr.msra.gmra.mxu0 %vm74_vm0, %v59_v4 }
  0x1c   :  { %2063 = vmatmul.msk.bf16.gmra.mxu0 %vm74_vm0, %v60_v12 }
  0x2c   :  { %2064 = vmatmul.msk.bf16.gmra.mxu0 %vm74_vm0, %v61_v14 }
  0x5e   :  { %v150_v53 = vpop.permute.xlu2 %149 }
  0x74   :  { %v140_v35 = vpop.permute.xlu1 %139 }
  0x75   :  { %v130_v20 = vpop.permute.xlu0 %129 }
  0x7c   :  { %v145_v44 = vpop.permute.xlu1 %144 }
  0x7d   :  { %v135_v29 = vpop.permute.xlu0 %134 }
  0x89   :  { %v93_v18 = vpop.f32.mrf.mxu0 }
  0x8a   :  { %v94_v19 = vadd.f32 %v2312_v17, %v93_v18 }
  0x8c   :  { %v107_v21 = vmul.f32 5.656854, %v94_v19 }
  0x8e   :  { %v117_v26 = vadd.f32 %v112_v22, %v107_v21 }
  0x90   :  { %v2600_v30 = vmul.f32 %v130_v20, %v117_v26 }
  0x91   :  { %v95_v23 = vpop.f32.mrf.mxu0 }
  0x92   :  { %v96_v24 = vadd.f32 %v2312_v17, %v95_v23 }
  0x94   :  { %v108_v27 = vmul.f32 5.656854, %v96_v24  ;;  %v157_v24 = vld [vmem:[%s3318_s3] sm:$0xff] }
  0x96   :  { %v118_v28 = vadd.f32 %v113_v25, %v108_v27 }
  0x98   :  { %v2602_v31 = vmul.f32 %v135_v29, %v118_v28 }
  0x99   :  { %v98_v32 = vpop.f32.mrf.mxu0 }
  0x9a   :  { %v173_v33 = vpack.c.bf16 %v2602_v31, %v2600_v30  ;;  %v99_v34 = vadd.f32 %v2312_v17, %v98_v32 }
  0x9c   :  { %2078 = vmatmul.msk.bf16.vlgmr.msra.gmra.mxu1 %vm196_vm1, %v173_v33  ;;  %v109_v36 = vmul.f32 5.656854, %v99_v34 }
  0x9e   :  { %v119_v41 = vadd.f32 %v114_v37, %v109_v36 }
  0xa0   :  { %v2613_v45 = vmul.f32 %v140_v35, %v119_v41  ;;  %v158_v35 = vld [vmem:[%s3318_s3 + $0x8] sm:$0xff] }
  0xa1   :  { %v100_v38 = vpop.f32.mrf.mxu0 }
  0xa2   :  { %v101_v39 = vadd.f32 %v2312_v17, %v100_v38 }
  0xa4   :  { %v110_v42 = vmul.f32 5.656854, %v101_v39 }
  0xa6   :  { %v120_v43 = vadd.f32 %v115_v40, %v110_v42 }
  0xa8   :  { %v2615_v46 = vmul.f32 %v145_v44, %v120_v43  ;;  %v159_v44 = vld [vmem:[%s3318_s3 + $0x10] sm:$0xff] }
  0xa9   :  { %v103_v47 = vpop.f32.mrf.mxu0 }
  0xaa   :  { %v174_v48 = vpack.c.bf16 %v2615_v46, %v2613_v45  ;;  %v104_v49 = vadd.f32 %v2312_v17, %v103_v47 }
  0xac   :  { %2079 = vmatmul.msk.bf16.gmra.mxu1 %vm196_vm1, %v174_v48  ;;  %v111_v50 = vmul.f32 5.656854, %v104_v49 }
  0xae   :  { %v121_v52 = vadd.f32 %v116_v51, %v111_v50 }
  0xb0   :  { %v2623_v55 = vmul.f32 %v150_v53, %v121_v52  ;;  %v160_v52 = vld [vmem:[%s3318_s3 + $0x18] sm:$0xff] }
  0xb1   :  { %v105_v54 = vpop.f32.mrf.mxu0 }
  0xb2   :  { %v175_v56 = vpack.c.bf16 %v2623_v55, %v2623_v55 }
  0xbc   :  { %2080 = vmatmul.msk.bf16.gmra.mxu1 %vm196_vm1, %v175_v56 }
 0x119   :  { %v215_v57 = vpop.f32.mrf.mxu1 }
 0x11a   :  { %v216_v60 = vadd.f32 %v2313_v58, %v215_v57 }
 0x121   :  { %v217_v59 = vpop.f32.mrf.mxu1 }
 0x122   :  { %v218_v61 = vadd.f32 %v2313_v58, %v217_v59 }
 0x124   :  { %v2631_v62 = vpack.c.bf16 %v218_v61, %v216_v60 }
 0x126   :  { %235 = vrot.lane.b32.xlu1 %v2631_v62, %s2458_s1 }
 0x129   :  { %v220_v63 = vpop.f32.mrf.mxu1 }
 0x12a   :  { %v221_v1 = vadd.f32 %v2313_v58, %v220_v63 }
 0x12e   :  { %452 = vrot.lane.b32.xlu1 %v2631_v62, %s2459_s2 }
 0x131   :  { %v222_v0 = vpop.f32.mrf.mxu1 }
 0x132   :  { %v223_v2 = vadd.f32 %v2313_v58, %v222_v0 }
 0x134   :  { %v2637_v3 = vpack.c.bf16 %v223_v2, %v221_v1 }
 0x136   :  { %237 = vrot.lane.b32.xlu0 %v2637_v3, %s2458_s1 }
 0x139   :  { %v225_v4 = vpop.f32.mrf.mxu1 }
 0x13a   :  { %v226_v5 = vadd.f32 %v2313_v58, %v225_v4 }
 0x13c   :  { %v2641_v6 = vpack.c.bf16 %v226_v5, %v226_v5 }
 0x13e   :  { %239 = vrot.lane.b32.xlu2 %v2641_v6, %s2458_s1  ;;  %454 = vrot.lane.b32.xlu0 %v2637_v3, %s2459_s2 }
 0x13f   :  { %450 = vrot.lane.b32.xlu1 %v2641_v6, %s2460_s29 }
 0x141   :  { %v227_v7 = vpop.f32.mrf.mxu1 }
 0x142   :  { %v2705_v7 = vld [vmem:[%s3318_s3 + $0x20] sm:$0xff] }
 0x146   :  { %456 = vrot.lane.b32.xlu2 %v2641_v6, %s2459_s2  ;;  %448 = vrot.lane.b32.xlu0 %v2637_v3, %s2460_s29 }
 0x14e   :  { %446 = vrot.lane.b32.xlu2 %v2631_v62, %s2460_s29 }
 0x198   :  { %v240_v8 = vpop.permute.xlu2 %239  ;;  %v236_v14 = vpop.permute.xlu1 %235 }
 0x199   :  { %v257_v9 = vsel %vm74_vm0, %v240_v8, 0  ;;  %v251_v16 = vsel %vm74_vm0, %v236_v14, 0 }
 0x19a   :  { %264 = vmatpush.bf16.xpose.msra.mxu2 %v257_v9 }
 0x1a0   :  { %v457_v10 = vpop.permute.xlu2 %456  ;;  %v453_v18 = vpop.permute.xlu1 %452 }
 0x1a1   :  { %v474_v11 = vsel %vm74_vm0, %v457_v10, 0  ;;  %v468_v19 = vsel %vm74_vm0, %v453_v18, 0 }
 0x1a2   :  { %481 = vmatpush.bf16.xpose.msrb.mxu1 %v474_v11 }
 0x1a8   :  { %v238_v12 = vpop.permute.xlu0 %237  ;;  %v447_v20 = vpop.permute.xlu2 %446 }
 0x1a9   :  { %v254_v13 = vsel %vm74_vm0, %v238_v12, 0 }
 0x1aa   :  { %265 = vmatpush.bf16.xpose.msra.mxu2 %v254_v13 }
 0x1b0   :  { %v455_v15 = vpop.permute.xlu0 %454 }
 0x1b1   :  { %v471_v17 = vsel %vm74_vm0, %v455_v15, 0  ;;  %v451_v22 = vpop.permute.xlu1 %450 }
 0x1b2   :  { %266 = vmatpush.bf16.xpose.msra.mxu2 %v251_v16  ;;  %482 = vmatpush.bf16.xpose.msrb.mxu1 %v471_v17 }
 0x1b8   :  { %v449_v21 = vpop.permute.xlu0 %448 }
 0x1b9   :  { %2081 = vmatmul.msk.bf16.vlgmr.msra.gmra.mxu2 %vm74_vm0, %v2631_v62 }
 0x1ba   :  { %483 = vmatpush.bf16.xpose.msrb.mxu1 %v468_v19 }
 0x1c1   :  { %2094 = vmatmul.msk.bf16.vlgmr.msrb.gmra.mxu1 %vm74_vm0, %v447_v20 }
 0x1c9   :  { %2082 = vmatmul.msk.bf16.gmra.mxu2 %vm74_vm0, %v2637_v3 }
 0x1d1   :  { %2095 = vmatmul.msk.bf16.gmra.mxu1 %vm74_vm0, %v449_v21 }
 0x1d9   :  { %2083 = vmatmul.msk.bf16.gmra.mxu2 %vm74_vm0, %v2641_v6 }
 0x1e1   :  { %2096 = vmatmul.msk.bf16.gmra.mxu1 %vm74_vm0, %v451_v22 }
 0x23c   :  { %v268_v23 = vpop.f32.mrf.mxu2 }
 0x23d   :  { %v282_v25 = vmul.f32 0.25, %v268_v23 }
 0x23e   :  { %v485_v26 = vpop.f32.mrf.mxu1 }
 0x23f   :  { %v499_v27 = vmul.f32 0.25, %v485_v26  ;;  %v287_v28 = vadd.f32 %v282_v25, %v157_v24 }
 0x241   :  { %v293_v29 = vsel %vm292_vm2, %v287_v28, -inf  ;;  %v504_v32 = vadd.f32 %v499_v27, %v157_v24 }
 0x242   :  { %294 = vmax.xlane.f32.xlu2 %v293_v29 }
 0x243   :  { %v509_v33 = vsel %vm292_vm2, %v504_v32, -inf }
 0x244   :  { %v270_v34 = vpop.f32.mrf.mxu2  ;;  %510 = vmax.xlane.f32.xlu0 %v509_v33 }
 0x245   :  { %v283_v36 = vmul.f32 0.25, %v270_v34 }
 0x246   :  { %v487_v37 = vpop.f32.mrf.mxu1 }
 0x247   :  { %v500_v38 = vmul.f32 0.25, %v487_v37  ;;  %v288_v39 = vadd.f32 %v283_v36, %v158_v35 }
 0x249   :  { %v505_v40 = vadd.f32 %v500_v38, %v158_v35  ;;  %v296_v41 = vsel %vm292_vm2, %v288_v39, -inf }
 0x24b   :  { %v512_v42 = vsel %vm292_vm2, %v505_v40, -inf }
 0x24c   :  { %v273_v43 = vpop.f32.mrf.mxu2  ;;  %297 = vmax.xlane.f32.xlu0 %v296_v41  ;;  %513 = vmax.xlane.f32.xlu1 %v512_v42 }
 0x24d   :  { %v284_v47 = vmul.f32 0.25, %v273_v43 }
 0x24e   :  { %v490_v48 = vpop.f32.mrf.mxu1 }
 0x24f   :  { %v289_v49 = vadd.f32 %v284_v47, %v159_v44  ;;  %v501_v2 = vmul.f32 0.25, %v490_v48 }
 0x251   :  { %v299_v50 = vsel %vm292_vm2, %v289_v49, -inf  ;;  %v2700_v5 = vadd.f32 %v501_v2, %v159_v44 }
 0x253   :  { %v515_v8 = vsel %vm292_vm2, %v2700_v5, -inf }
 0x254   :  { %v275_v51 = vpop.f32.mrf.mxu2  ;;  %300 = vmax.xlane.f32.xlu1 %v299_v50 }
 0x255   :  { %v285_v53 = vmul.f32 0.25, %v275_v51 }
 0x256   :  { %v492_v54 = vpop.f32.mrf.mxu1 }
 0x257   :  { %v290_v56 = vadd.f32 %v285_v53, %v160_v52  ;;  %v502_v63 = vmul.f32 0.25, %v492_v54 }
 0x259   :  { %v302_v57 = vsel %vm292_vm2, %v290_v56, -inf  ;;  %v2696_v0 = vadd.f32 %v502_v63, %v160_v52 }
 0x25a   :  { %303 = vmax.xlane.f32.xlu2 %v302_v57 }
 0x25b   :  { %v518_v1 = vsel %vm292_vm2, %v2696_v0, -inf }
 0x25c   :  { %v278_v58 = vpop.f32.mrf.mxu2 }
 0x25d   :  { %v286_v4 = vmul.f32 0.25, %v278_v58 }
 0x25e   :  { %v2688_v59 = vpop.f32.mrf.mxu1 }
 0x25f   :  { %v2710_v9 = vadd.f32 %v286_v4, %v2705_v7 }
 0x260   :  { %351 = vrot.lane.b32.xlu0 %v2631_v62, %s2461_s6 }
 0x261   :  { %v305_v10 = vsel %vm292_vm2, %v2710_v9, -inf }
 0x264   :  { %v280_v60 = vpop.f32.mrf.mxu2 }
 0x266   :  { %v497_v61 = vpop.f32.mrf.mxu1 }
 0x26d   :  { %355 = vrot.lane.b32.xlu1 %v2641_v6, %s2461_s6 }
 0x272   :  { %353 = vrot.lane.b32.xlu2 %v2637_v3, %s2461_s6 }
 0x28a   :  { %519 = vmax.xlane.f32.xlu0 %v518_v1 }
 0x297   :  { %516 = vmax.xlane.f32.xlu1 %v515_v8 }
 0x29b   :  { %306 = vmax.xlane.f32.xlu2 %v305_v10 }
 0x2b5   :  { %v295_v11 = vpop.xlane.xlu2 %294 }
 0x2b6   :  { %v308_v14 = vsub.f32 %v287_v28, %v295_v11 }
 0x2b7   :  { %v511_v12 = vpop.xlane.xlu0 %510 }
 0x2b8   :  { %v524_v13 = vsub.f32 %v504_v32, %v511_v12  ;;  %v313_v16 = vmul.f32 1.442695, %v308_v14 }
 0x2ba   :  { %v529_v15 = vmul.f32 1.442695, %v524_v13 }
 0x2bc   :  { %2330 = vpow2.f32 %v529_v15 }
 0x2bd   :  { %2332 = vpow2.f32 %v313_v16 }
 0x2bf   :  { %v298_v17 = vpop.xlane.xlu0 %297  ;;  %v514_v18 = vpop.xlane.xlu1 %513 }
 0x2c0   :  { %v309_v19 = vsub.f32 %v288_v39, %v298_v17  ;;  %v525_v20 = vsub.f32 %v505_v40, %v514_v18 }
 0x2c2   :  { %v2714_v21 = vpop.eup %2330  ;;  %v315_v22 = vmul.f32 1.442695, %v309_v19  ;;  %v531_v23 = vmul.f32 1.442695, %v525_v20  ;;  %v503_v19 = vmul.f32 0.25, %v2688_v59 }
 0x2c3   :  { %v539_v24 = vsel %vm292_vm2, %v2714_v21, 0.0  ;;  %v2718_v26 = vpop.eup %2332 }
 0x2c4   :  { %2334 = vpow2.f32 %v315_v22  ;;  %540 = vadd.xlane.f32.xlu2 %v539_v24  ;;  %v323_v33 = vsel %vm292_vm2, %v2718_v26, 0.0  ;;  %v508_v22 = vadd.f32 %v503_v19, %v2705_v7 }
 0x2c5   :  { %2336 = vpow2.f32 %v531_v23 }
 0x2c7   :  { %v301_v25 = vpop.xlane.xlu1 %300 }
 0x2c8   :  { %v310_v27 = vsub.f32 %v289_v49, %v301_v25 }
 0x2ca   :  { %v2720_v28 = vpop.eup %2334  ;;  %v317_v29 = vmul.f32 1.442695, %v310_v27 }
 0x2cb   :  { %v2722_v32 = vpop.eup %2336  ;;  %v326_v34 = vsel %vm292_vm2, %v2720_v28, 0.0 }
 0x2cc   :  { %2338 = vpow2.f32 %v317_v29  ;;  %324 = vadd.xlane.f32.xlu2 %v323_v33  ;;  %327 = vadd.xlane.f32.xlu0 %v326_v34  ;;  %v542_v35 = vsel %vm292_vm2, %v2722_v32, 0.0 }
 0x2cd   :  { %543 = vadd.xlane.f32.xlu1 %v542_v35  ;;  %v304_v36 = vpop.xlane.xlu2 %303 }
 0x2ce   :  { %v311_v37 = vsub.f32 %v290_v56, %v304_v36 }
 0x2d0   :  { %v319_v38 = vmul.f32 1.442695, %v311_v37 }
 0x2d2   :  { %v2730_v39 = vpop.eup %2338  ;;  %2340 = vpow2.f32 %v319_v38  ;;  %v352_v48 = vpop.permute.xlu0 %351  ;;  %v2273_v38 = vld [vmem:[%s3319_s9] sm:$0xff] }
 0x2d3   :  { %v329_v40 = vsel %vm292_vm2, %v2730_v39, 0.0  ;;  %422 = vmatpush.bf16.msrb.mxu0 %v2273_v38 }
 0x2d4   :  { %330 = vadd.xlane.f32.xlu2 %v329_v40 }
 0x2d5   :  { %v354_v47 = vpop.permute.xlu2 %353 }
 0x2d8   :  { %v2734_v41 = vpop.eup %2340 }
 0x2d9   :  { %v332_v42 = vsel %vm292_vm2, %v2734_v41, 0.0 }
 0x2da   :  { %333 = vadd.xlane.f32.xlu1 %v332_v42 }
 0x2df   :  { %v356_v43 = vpop.permute.xlu1 %355 }
 0x2e0   :  { %v370_v44 = vsel %vm368_vm3, %v356_v43, 0 }
 0x2e1   :  { %377 = vmatpush.bf16.msra.mxu3 %v370_v44 }
 0x2e5   :  { %378 = vmatpush.bf16.msra.mxu3 %v354_v47 }
 0x2e9   :  { %379 = vmatpush.bf16.msra.mxu3 %v352_v48 }
 0x2ec   :  { %569 = vrot.lane.b32.xlu2 %v2637_v3, %s2462_s24 }
 0x2f3   :  { %567 = vrot.lane.b32.xlu1 %v2631_v62, %s2462_s24 }
 0x2fd   :  { %v520_v49 = vpop.xlane.xlu0 %519 }
 0x2fe   :  { %v527_v50 = vsub.f32 %v2696_v0, %v520_v49 }
 0x300   :  { %v535_v54 = vmul.f32 1.442695, %v527_v50 }
 0x30a   :  { %v517_v51 = vpop.xlane.xlu1 %516 }
 0x30b   :  { %v526_v52 = vsub.f32 %v2700_v5, %v517_v51 }
 0x30d   :  { %v533_v53 = vmul.f32 1.442695, %v526_v52 }
 0x30e   :  { %v307_v56 = vpop.xlane.xlu2 %306 }
 0x30f   :  { %2342 = vpow2.f32 %v533_v53  ;;  %v312_v57 = vsub.f32 %v2710_v9, %v307_v56 }
 0x310   :  { %2344 = vpow2.f32 %v535_v54 }
 0x311   :  { %v321_v58 = vmul.f32 1.442695, %v312_v57  ;;  %v2274_v57 = vld [vmem:[%s3319_s9 + $0x8] sm:$0xff] }
 0x312   :  { %638 = vmatpush.bf16.msrb.mxu2 %v2274_v57 }
 0x313   :  { %2346 = vpow2.f32 %v321_v58 }
 0x315   :  { %v2746_v60 = vpop.eup %2342 }
 0x316   :  { %v545_v62 = vsel %vm292_vm2, %v2746_v60, 0.0  ;;  %v2345_v3 = vpop.eup %2344 }
 0x317   :  { %546 = vadd.xlane.f32.xlu2 %v545_v62  ;;  %v548_v0 = vsel %vm292_vm2, %v2345_v3, 0.0 }
 0x319   :  { %v2347_v61 = vpop.eup %2346 }
 0x31a   :  { %v335_v63 = vsel %vm292_vm2, %v2347_v61, 0.0 }
 0x31b   :  { %336 = vadd.xlane.f32.xlu0 %v335_v63 }
 0x31d   :  { %549 = vadd.xlane.f32.xlu1 %v548_v0 }
 0x32f   :  { %571 = vrot.lane.b32.xlu0 %v2641_v6, %s2462_s24 }
 0x337   :  { %v541_v1 = vpop.xlane.xlu2 %540 }
 0x338   :  { %2348 = vrcp.f32 %v541_v1 }
 0x33e   :  { %v2349_v8 = vpop.eup %2348 }
 0x33f   :  { %v325_v2 = vpop.xlane.xlu2 %324  ;;  %v328_v4 = vpop.xlane.xlu0 %327  ;;  %v559_v14 = vmul.f32 %v2349_v8, %v2714_v21  ;;  %v521_v21 = vsel %vm292_vm2, %v508_v22, -inf }
 0x340   :  { %2350 = vrcp.f32 %v325_v2  ;;  %v544_v5 = vpop.xlane.xlu1 %543 }
 0x341   :  { %2352 = vrcp.f32 %v328_v4 }
 0x342   :  { %2354 = vrcp.f32 %v544_v5 }
 0x346   :  { %v2351_v9 = vpop.eup %2350 }
 0x347   :  { %v2353_v10 = vpop.eup %2352  ;;  %v343_v11 = vmul.f32 %v2351_v9, %v2718_v26  ;;  %v331_v17 = vpop.xlane.xlu2 %330 }
 0x348   :  { %v2355_v12 = vpop.eup %2354  ;;  %v344_v13 = vmul.f32 %v2353_v10, %v2720_v28 }
 0x349   :  { %v560_v6 = vmul.f32 %v2355_v12, %v2722_v32 }
 0x34a   :  { %v348_v15 = vpack.c.bf16 %v344_v13, %v343_v11 }
 0x34b   :  { %v564_v16 = vpack.c.bf16 %v560_v6, %v559_v14 }
 0x34c   :  { %2084 = vmatmul.msk.bf16.vlgmr.msra.gmra.mxu3 %vm292_vm2, %v348_v15  ;;  %v2314_v15 = vld [vmem:[%s3320_s13] ss:$0 sm:$0xff] }
 0x34d   :  { %v334_v18 = vpop.xlane.xlu1 %333 }
 0x34e   :  { %2356 = vrcp.f32 %v334_v18 }
 0x34f   :  { %2358 = vrcp.f32 %v331_v17  ;;  %v570_v34 = vpop.permute.xlu2 %569 }
 0x354   :  { %v2357_v20 = vpop.eup %2356 }
 0x355   :  { %v2359_v23 = vpop.eup %2358  ;;  %v346_v24 = vmul.f32 %v2357_v20, %v2734_v41 }
 0x356   :  { %v345_v25 = vmul.f32 %v2359_v23, %v2730_v39 }
 0x358   :  { %v349_v26 = vpack.c.bf16 %v346_v24, %v345_v25 }
 0x359   :  { %522 = vmax.xlane.f32.xlu0 %v521_v21 }
 0x35c   :  { %2085 = vmatmul.msk.bf16.gmra.mxu3 %vm292_vm2, %v349_v26 }
 0x365   :  { %v568_v33 = vpop.permute.xlu1 %567 }
 0x38a   :  { %v547_v36 = vpop.xlane.xlu2 %546 }
 0x38e   :  { %v337_v27 = vpop.xlane.xlu0 %336 }
 0x38f   :  { %2360 = vrcp.f32 %v337_v27 }
 0x390   :  { %v550_v35 = vpop.xlane.xlu1 %549 }
 0x391   :  { %2362 = vrcp.f32 %v550_v35 }
 0x392   :  { %2364 = vrcp.f32 %v547_v36 }
 0x395   :  { %v2361_v28 = vpop.eup %2360 }
 0x396   :  { %v347_v29 = vmul.f32 %v2361_v28, %v2347_v61 }
 0x397   :  { %v2363_v37 = vpop.eup %2362 }
 0x398   :  { %v350_v32 = vpack.c.bf16 %v347_v29, %v347_v29  ;;  %v2365_v39 = vpop.eup %2364  ;;  %v562_v40 = vmul.f32 %v2363_v37, %v2345_v3  ;;  %v2463_v37 = vmov 32.0  }
 0x399   :  { %v561_v41 = vmul.f32 %v2365_v39, %v2746_v60 }
 0x39a   :  { %2086 = vmatmul.msk.bf16.gmra.mxu3 %vm292_vm2, %v350_v32 }
 0x39b   :  { %v565_v42 = vpack.c.bf16 %v562_v40, %v561_v41 }
 0x3a1   :  { %v572_v59 = vpop.permute.xlu0 %571 }
 0x3a2   :  { %v585_v7 = vsel %vm368_vm3, %v572_v59, 0 }
 0x3a3   :  { %592 = vmatpush.bf16.msrb.mxu3 %v585_v7 }
 0x3a7   :  { %593 = vmatpush.bf16.msrb.mxu3 %v570_v34 }
 0x3ab   :  { %594 = vmatpush.bf16.msrb.mxu3 %v568_v33 }
 0x3ae   :  { %2097 = vmatmul.msk.bf16.vlgmr.msrb.gmra.mxu3 %vm292_vm2, %v564_v16 }
 0x3be   :  { %2098 = vmatmul.msk.bf16.gmra.mxu3 %vm292_vm2, %v565_v42 }
 0x3cc   :  { %v523_v43 = vpop.xlane.xlu0 %522 }
 0x3cd   :  { %v528_v44 = vsub.f32 %v508_v22, %v523_v43 }
 0x3cf   :  { %v537_v47 = vmul.f32 1.442695, %v528_v44  ;;  %v381_v48 = vpop.f32.mrf.mxu3 }
 0x3d1   :  { %2366 = vpow2.f32 %v537_v47 }
 0x3d7   :  { %v2367_v49 = vpop.eup %2366  ;;  %v383_v50 = vpop.f32.mrf.mxu3 }
 0x3d8   :  { %v395_v51 = vpack.c.bf16 %v383_v50, %v381_v48  ;;  %v551_v52 = vsel %vm292_vm2, %v2367_v49, 0.0 }
 0x3d9   :  { %552 = vadd.xlane.f32.xlu0 %v551_v52 }
 0x3da   :  { %2091 = vmatmul.msk.bf16.vlgmr.msrb.gmra.mxu0 %vm74_vm0, %v395_v51 }
 0x3df   :  { %v386_v53 = vpop.f32.mrf.mxu3 }
 0x3e7   :  { %v388_v54 = vpop.f32.mrf.mxu3 }
 0x3e8   :  { %v396_v56 = vpack.c.bf16 %v388_v54, %v386_v53 }
 0x3ea   :  { %2092 = vmatmul.msk.bf16.gmra.mxu0 %vm74_vm0, %v396_v56 }
 0x41d   :  { %v391_v58 = vpop.f32.mrf.mxu3 }
 0x41e   :  { %v397_v60 = vpack.c.bf16 %v391_v58, %v391_v58 }
 0x420   :  { %2093 = vmatmul.msk.bf16.gmra.mxu0 %vm74_vm0, %v397_v60 }
 0x425   :  { %v393_v62 = vpop.f32.mrf.mxu3 }
 0x431   :  { %v596_v3 = vpop.f32.mrf.mxu3 }
 0x439   :  { %v598_v61 = vpop.f32.mrf.mxu3 }
 0x43a   :  { %v610_v63 = vpack.c.bf16 %v598_v61, %v596_v3 }
 0x43c   :  { %2106 = vmatmul.msk.bf16.vlgmr.msrb.gmra.mxu2 %vm74_vm0, %v610_v63 }
 0x441   :  { %v601_v0 = vpop.f32.mrf.mxu3 }
 0x449   :  { %v603_v1 = vpop.f32.mrf.mxu3 }
 0x44a   :  { %v611_v2 = vpack.c.bf16 %v603_v1, %v601_v0 }
 0x44c   :  { %v553_v4 = vpop.xlane.xlu0 %552  ;;  %2107 = vmatmul.msk.bf16.gmra.mxu2 %vm74_vm0, %v611_v2 }
 0x44d   :  { %2368 = vrcp.f32 %v553_v4 }
 0x44e   :  { %2370 = vrcp.f32 %v2463_v37 }
 0x453   :  { %v2369_v5 = vpop.eup %2368 }
 0x454   :  { %v563_v8 = vmul.f32 %v2369_v5, %v2367_v49  ;;  %v2371_v38 = vpop.eup %2370 }
 0x455   :  { %vm684_vm4 = vweird.f32 %v2371_v38 }
 0x456   :  { %v566_v9 = vpack.c.bf16 %v563_v8, %v563_v8 }
 0x457   :  { %v424_v10 = vpop.f32.mrf.mxu0 }
 0x458   :  { %2099 = vmatmul.msk.bf16.gmra.mxu3 %vm292_vm2, %v566_v9  ;;  %v441_v16 = vadd.f32 %v2314_v15, %v424_v10 }
 0x45f   :  { %v426_v11 = vpop.f32.mrf.mxu0 }
 0x460   :  { %v442_v22 = vadd.f32 %v2314_v15, %v426_v11  ;;  %v2276_v11 = vld [vmem:[%s3321_s10 + $0x8] sm:$0xff] }
 0x461   :  { %835 = vmatpush.bf16.msra.mxu0 %v2276_v11 }
 0x467   :  { %v429_v12 = vpop.f32.mrf.mxu0 }
 0x468   :  { %v443_v26 = vadd.f32 %v2314_v15, %v429_v12 }
 0x46f   :  { %v431_v13 = vpop.f32.mrf.mxu0 }
 0x49d   :  { %v2783_v14 = vpop.f32.mrf.mxu0 }
 0x49e   :  { %v445_v1 = vadd.f32 %v2314_v15, %v2783_v14  ;;  %v2275_v14 = vld [vmem:[%s3321_s10] sm:$0xff] }
 0x49f   :  { %836 = vmatpush.bf16.msra.mxu0 %v2275_v14 }
 0x4a5   :  { %v436_v6 = vpop.f32.mrf.mxu0 }
 0x4bf   :  { %v640_v17 = vpop.f32.mrf.mxu2 }
 0x4c0   :  { %v654_v18 = vadd.f32 %v640_v17, %v441_v16 }
 0x4c2   :  { %v659_v19 = vadd.f32 %v654_v18, %v2600_v30  ;;  %v444_v30 = vadd.f32 %v2314_v15, %v431_v13 }
 0x4c4   :  { %v664_v20 = vsel %vm196_vm1, %v659_v19, 0.0 }
 0x4c5   :  { %665 = vadd.xlane.f32.xlu2 %v664_v20 }
 0x4c7   :  { %v642_v23 = vpop.f32.mrf.mxu2 }
 0x4c8   :  { %v655_v24 = vadd.f32 %v642_v23, %v442_v22 }
 0x4ca   :  { %v660_v21 = vadd.f32 %v655_v24, %v2602_v31 }
 0x4cc   :  { %v667_v25 = vsel %vm196_vm1, %v660_v21, 0.0 }
 0x4cd   :  { %668 = vadd.xlane.f32.xlu0 %v667_v25 }
 0x4cf   :  { %v645_v27 = vpop.f32.mrf.mxu2 }
 0x4d0   :  { %v656_v28 = vadd.f32 %v645_v27, %v443_v26 }
 0x4d2   :  { %v661_v29 = vadd.f32 %v656_v28, %v2613_v45  ;;  %v680_v45 = vmul.f32 32.0, %v2371_v38  ;;  %v2284_v28 = vld [vmem:[%s3322_s12 + $0x38] sm:$0xff] }
 0x4d3   :  { %927 = vmatpush.bf16.msra.mxu1 %v2284_v28 }
 0x4d4   :  { %v670_v32 = vsel %vm196_vm1, %v661_v29, 0.0  ;;  %v681_v39 = vsub.f32 1.0, %v680_v45  ;;  %v2282_v45 = vld [vmem:[%s3322_s12 + $0x28] sm:$0xff] }
 0x4d5   :  { %671 = vadd.xlane.f32.xlu1 %v670_v32 }
 0x4d6   :  { %v682_v40 = vmul.f32 %v2371_v38, %v681_v39 }
 0x4d7   :  { %v647_v59 = vpop.f32.mrf.mxu2 }
 0x4d8   :  { %v657_v7 = vadd.f32 %v647_v59, %v444_v30  ;;  %v683_v41 = vadd.f32 %v2371_v38, %v682_v40 }
 0x4da   :  { %v662_v33 = vadd.f32 %v657_v7, %v2615_v46  ;;  %v2797_v42 = vsel %vm684_vm4, %v2371_v38, %v683_v41  ;;  %v2283_v7 = vld [vmem:[%s3322_s12 + $0x30] sm:$0xff]  ;;  %v2857_v41 = vld [vmem:[%s3320_s13 + $0x2] ss:$0 sm:$0xff] }
 0x4db   :  { %v606_v34 = vpop.f32.mrf.mxu3  ;;  %928 = vmatpush.bf16.msra.mxu1 %v2283_v7 }
 0x4dc   :  { %v612_v35 = vpack.c.bf16 %v606_v34, %v606_v34  ;;  %v673_v31 = vsel %vm196_vm1, %v662_v33, 0.0 }
 0x4dd   :  { %674 = vadd.xlane.f32.xlu2 %v673_v31 }
 0x4de   :  { %2108 = vmatmul.msk.bf16.gmra.mxu2 %vm74_vm0, %v612_v35  ;;  %v2848_v35 = vld [vmem:[%s3320_s13 + $0x1] ss:$0 sm:$0xff] }
 0x4df   :  { %929 = vmatpush.bf16.msra.mxu1 %v2282_v45 }
 0x4e3   :  { %v608_v36 = vpop.f32.mrf.mxu3 }
 0x538   :  { %v666_v43 = vpop.xlane.xlu2 %665 }
 0x539   :  { %v686_v46 = vmul.f32 %v2797_v42, %v666_v43 }
 0x53b   :  { %v2800_v44 = vsub.f32 %v659_v19, %v686_v46 }
 0x53d   :  { %v696_v47 = vmul.f32 %v2800_v44, %v2800_v44 }
 0x53f   :  { %v701_v48 = vsel %vm196_vm1, %v696_v47, 0.0 }
 0x540   :  { %702 = vadd.xlane.f32.xlu0 %v701_v48  ;;  %v669_v49 = vpop.xlane.xlu0 %668  ;;  %v2281_v48 = vld [vmem:[%s3322_s12 + $0x20] sm:$0xff] }
 0x541   :  { %v687_v50 = vmul.f32 %v2797_v42, %v669_v49  ;;  %930 = vmatpush.bf16.msra.mxu1 %v2281_v48 }
 0x543   :  { %v2806_v51 = vsub.f32 %v660_v21, %v687_v50 }
 0x545   :  { %v697_v52 = vmul.f32 %v2806_v51, %v2806_v51 }
 0x547   :  { %v704_v53 = vsel %vm196_vm1, %v697_v52, 0.0 }
 0x548   :  { %705 = vadd.xlane.f32.xlu1 %v704_v53  ;;  %v672_v54 = vpop.xlane.xlu1 %671 }
 0x549   :  { %v688_v56 = vmul.f32 %v2797_v42, %v672_v54 }
 0x54b   :  { %v2812_v57 = vsub.f32 %v661_v29, %v688_v56 }
 0x54d   :  { %v698_v58 = vmul.f32 %v2812_v57, %v2812_v57 }
 0x54f   :  { %v707_v60 = vsel %vm196_vm1, %v698_v58, 0.0 }
 0x550   :  { %708 = vadd.xlane.f32.xlu0 %v707_v60  ;;  %v675_v62 = vpop.xlane.xlu2 %674 }
 0x551   :  { %v689_v3 = vmul.f32 %v2797_v42, %v675_v62 }
 0x553   :  { %v2818_v61 = vsub.f32 %v662_v33, %v689_v3 }
 0x555   :  { %v699_v63 = vmul.f32 %v2818_v61, %v2818_v61 }
 0x557   :  { %v710_v0 = vsel %vm196_vm1, %v699_v63, 0.0 }
 0x558   :  { %711 = vadd.xlane.f32.xlu1 %v710_v0 }
 0x561   :  { %v650_v2 = vpop.f32.mrf.mxu2 }
 0x562   :  { %v658_v4 = vadd.f32 %v650_v2, %v445_v1 }
 0x564   :  { %v2825_v5 = vadd.f32 %v658_v4, %v2623_v55 }
 0x566   :  { %v676_v8 = vsel %vm196_vm1, %v2825_v5, 0.0 }
 0x567   :  { %677 = vadd.xlane.f32.xlu2 %v676_v8 }
 0x569   :  { %v652_v9 = vpop.f32.mrf.mxu2 }
 0x5b3   :  { %v703_v10 = vpop.xlane.xlu0 %702 }
 0x5b4   :  { %v716_v12 = vmul.f32 %v703_v10, %v2797_v42 }
 0x5b6   :  { %v721_v13 = vadd.f32 1e-05, %v716_v12 }
 0x5b8   :  { %2372 = vrsqrt.f32 %v721_v13  ;;  %vm732_vm6 = vweird.f32 %v721_v13 }
 0x5bb   :  { %v706_v55 = vpop.xlane.xlu1 %705 }
 0x5bc   :  { %v717_v6 = vmul.f32 %v706_v55, %v2797_v42  ;;  %v2279_v55 = vld [vmem:[%s3322_s12 + $0x10] sm:$0xff] }
 0x5be   :  { %v2373_v15 = vpop.eup %2372  ;;  %v722_v16 = vadd.f32 1e-05, %v717_v6  ;;  %v2278_v6 = vld [vmem:[%s3322_s12 + $0x8] sm:$0xff] }
 0x5bf   :  { %v727_v17 = vmul.f32 %v2373_v15, %v721_v13  ;;  %vm733_vm5 = vweird.f32 %v2373_v15 }
 0x5c0   :  { %2374 = vrsqrt.f32 %v722_v16  ;;  %vm734_vm7 = vmor %vm732_vm6, %vm733_vm5  ;;  %vm742_vm9 = vweird.f32 %v722_v16 }
 0x5c1   :  { %v728_v18 = vmul.f32 %v2373_v15, %v727_v17 }
 0x5c3   :  { %v729_v19 = vmul.f32 0.5, %v728_v18  ;;  %v709_v20 = vpop.xlane.xlu0 %708 }
 0x5c4   :  { %v718_v22 = vmul.f32 %v709_v20, %v2797_v42  ;;  %v2317_v20 = vld [vmem:[%s3323_s11] ss:$0 sm:$0xff] }
 0x5c5   :  { %v730_v23 = vsub.f32 1.5, %v729_v19 }
 0x5c6   :  { %v2375_v24 = vpop.eup %2374  ;;  %v723_v21 = vadd.f32 1e-05, %v718_v22 }
 0x5c7   :  { %v731_v25 = vmul.f32 %v2373_v15, %v730_v23  ;;  %v737_v26 = vmul.f32 %v2375_v24, %v722_v16  ;;  %vm743_vm8 = vweird.f32 %v2375_v24 }
 0x5c8   :  { %2376 = vrsqrt.f32 %v723_v21  ;;  %vm744_vm10 = vmor %vm742_vm9, %vm743_vm8  ;;  %vm752_vm12 = vweird.f32 %v723_v21 }
 0x5c9   :  { %v738_v27 = vmul.f32 %v2375_v24, %v737_v26  ;;  %v735_v29 = vsel %vm734_vm7, %v2373_v15, %v731_v25  ;;  %v2277_v15 = vld [vmem:[%s3322_s12] sm:$0xff] }
 0x5ca   :  { %v776_v31 = vmul.f32 %v735_v29, %v2800_v44 }
 0x5cb   :  { %v739_v32 = vmul.f32 0.5, %v738_v27  ;;  %v712_v30 = vpop.xlane.xlu1 %711 }
 0x5cc   :  { %v719_v59 = vmul.f32 %v712_v30, %v2797_v42  ;;  %v784_v43 = vmul.f32 %v2848_v35, %v776_v31 }
 0x5cd   :  { %v740_v33 = vsub.f32 1.5, %v739_v32 }
 0x5ce   :  { %v2377_v34 = vpop.eup %2376  ;;  %v724_v36 = vadd.f32 1e-05, %v719_v59  ;;  %v2866_v52 = vadd.f32 %v2857_v41, %v784_v43 }
 0x5cf   :  { %v741_v37 = vmul.f32 %v2375_v24, %v740_v33  ;;  %v747_v38 = vmul.f32 %v2377_v34, %v723_v21  ;;  %vm753_vm11 = vweird.f32 %v2377_v34 }
 0x5d0   :  { %2378 = vrsqrt.f32 %v724_v36  ;;  %vm754_vm13 = vmor %vm752_vm12, %vm753_vm11  ;;  %vm762_vm15 = vweird.f32 %v724_v36 }
 0x5d1   :  { %v745_v39 = vsel %vm744_vm10, %v2375_v24, %v741_v37  ;;  %v748_v40 = vmul.f32 %v2377_v34, %v747_v38 }
 0x5d2   :  { %v777_v46 = vmul.f32 %v745_v39, %v2806_v51 }
 0x5d3   :  { %v749_v44 = vmul.f32 0.5, %v748_v40 }
 0x5d4   :  { %v785_v47 = vmul.f32 %v2848_v35, %v777_v46 }
 0x5d5   :  { %v750_v49 = vsub.f32 1.5, %v749_v44  ;;  %v2318_v44 = vld [vmem:[%s3320_s13 + $0x5] ss:$0 sm:$0xff] }
 0x5d6   :  { %v2379_v50 = vpop.eup %2378  ;;  %v2869_v53 = vadd.f32 %v2857_v41, %v785_v47 }
 0x5d7   :  { %v751_v54 = vmul.f32 %v2377_v34, %v750_v49  ;;  %v757_v56 = vmul.f32 %v2379_v50, %v724_v36  ;;  %vm763_vm14 = vweird.f32 %v2379_v50 }
 0x5d8   :  { %v797_v51 = vpack.c.bf16 %v2869_v53, %v2866_v52  ;;  %vm764_vm4 = vmor %vm762_vm15, %vm763_vm14 }
 0x5d9   :  { %v758_v58 = vmul.f32 %v2379_v50, %v757_v56  ;;  %v755_v62 = vsel %vm754_vm13, %v2377_v34, %v751_v54 }
 0x5da   :  { %2117 = vmatmul.msk.bf16.vlgmr.msra.gmra.mxu0 %vm196_vm1, %v797_v51  ;;  %v678_v60 = vpop.xlane.xlu2 %677  ;;  %v778_v2 = vmul.f32 %v755_v62, %v2812_v57 }
 0x5db   :  { %v759_v3 = vmul.f32 0.5, %v758_v58  ;;  %v690_v63 = vmul.f32 %v2797_v42, %v678_v60 }
 0x5dc   :  { %v786_v12 = vmul.f32 %v2848_v35, %v778_v2 }
 0x5dd   :  { %v760_v0 = vsub.f32 1.5, %v759_v3  ;;  %v695_v1 = vsub.f32 %v2825_v5, %v690_v63 }
 0x5de   :  { %v2882_v14 = vadd.f32 %v2857_v41, %v786_v12 }
 0x5df   :  { %v761_v4 = vmul.f32 %v2379_v50, %v760_v0  ;;  %v700_v8 = vmul.f32 %v695_v1, %v695_v1 }
 0x5e1   :  { %v765_v9 = vsel %vm764_vm4, %v2379_v50, %v761_v4  ;;  %v713_v10 = vsel %vm196_vm1, %v700_v8, 0.0 }
 0x5e2   :  { %v779_v11 = vmul.f32 %v765_v9, %v2818_v61  ;;  %714 = vadd.xlane.f32.xlu2 %v713_v10  ;;  %v2280_v61 = vld [vmem:[%s3322_s12 + $0x18] sm:$0xff] }
 0x5e3   :  { %931 = vmatpush.bf16.msra.mxu1 %v2280_v61 }
 0x5e4   :  { %v787_v13 = vmul.f32 %v2848_v35, %v779_v11 }
 0x5e6   :  { %v2885_v5 = vadd.f32 %v2857_v41, %v787_v13 }
 0x5e7   :  { %932 = vmatpush.bf16.msra.mxu1 %v2279_v55 }
 0x5e8   :  { %v798_v57 = vpack.c.bf16 %v2885_v5, %v2882_v14 }
 0x5ea   :  { %2118 = vmatmul.msk.bf16.gmra.mxu0 %vm196_vm1, %v798_v57 }
 0x5eb   :  { %933 = vmatpush.bf16.msra.mxu1 %v2278_v6 }
 0x5ef   :  { %934 = vmatpush.bf16.msra.mxu1 %v2277_v15 }
 0x655   :  { %v715_v16 = vpop.xlane.xlu2 %714 }
 0x656   :  { %v720_v17 = vmul.f32 %v715_v16, %v2797_v42 }
 0x657   :  { %v838_v18 = vpop.f32.mrf.mxu0 }
 0x658   :  { %v725_v19 = vadd.f32 1e-05, %v720_v17  ;;  %v839_v22 = vadd.f32 %v2317_v20, %v838_v18 }
 0x65a   :  { %2380 = vrsqrt.f32 %v725_v19  ;;  %v852_v26 = vmax.f32 %v839_v22, 0.0  ;;  %vm772_vm6 = vweird.f32 %v725_v19 }
 0x65f   :  { %v840_v23 = vpop.f32.mrf.mxu0 }
 0x660   :  { %v2381_v24 = vpop.eup %2380  ;;  %v841_v21 = vadd.f32 %v2317_v20, %v840_v23 }
 0x661   :  { %v767_v25 = vmul.f32 %v2381_v24, %v725_v19  ;;  %vm773_vm5 = vweird.f32 %v2381_v24 }
 0x662   :  { %v853_v27 = vmax.f32 %v841_v21, 0.0  ;;  %vm774_vm7 = vmor %vm772_vm6, %vm773_vm5 }
 0x663   :  { %v768_v28 = vmul.f32 %v2381_v24, %v767_v25 }
 0x664   :  { %v857_v29 = vpack.c.bf16 %v853_v27, %v852_v26 }
 0x665   :  { %v769_v32 = vmul.f32 0.5, %v768_v28 }
 0x666   :  { %935 = vmatmul.bf16.vlgmr.msra.gmra.mxu1 %v857_v29 }
 0x667   :  { %v770_v30 = vsub.f32 1.5, %v769_v32  ;;  %v843_v59 = vpop.f32.mrf.mxu0  ;;  %v2286_v32 = vld [vmem:[%s3316_s7 + $0x18] sm:$0xff] }
 0x668   :  { %v844_v31 = vadd.f32 %v2317_v20, %v843_v59  ;;  %1133 = vmatpush.bf16.msra.mxu3 %v2286_v32 }
 0x669   :  { %v771_v7 = vmul.f32 %v2381_v24, %v770_v30 }
 0x66a   :  { %v854_v39 = vmax.f32 %v844_v31, 0.0 }
 0x66b   :  { %v775_v33 = vsel %vm774_vm7, %v2381_v24, %v771_v7  ;;  %v2285_v7 = vld [vmem:[%s3316_s7 + $0x10] sm:$0xff] }
 0x66c   :  { %v780_v34 = vmul.f32 %v775_v33, %v695_v1  ;;  %1134 = vmatpush.bf16.msra.mxu3 %v2285_v7 }
 0x66e   :  { %v788_v36 = vmul.f32 %v2848_v35, %v780_v34 }
 0x66f   :  { %v845_v37 = vpop.f32.mrf.mxu0 }
 0x670   :  { %v846_v38 = vadd.f32 %v2317_v20, %v845_v37  ;;  %v796_v45 = vadd.f32 %v2857_v41, %v788_v36 }
 0x672   :  { %v855_v40 = vmax.f32 %v846_v38, 0.0  ;;  %v799_v43 = vpack.c.bf16 %v796_v45, %v796_v45 }
 0x674   :  { %2119 = vmatmul.msk.bf16.gmra.mxu0 %vm196_vm1, %v799_v43  ;;  %v858_v46 = vpack.c.bf16 %v855_v40, %v854_v39 }
 0x676   :  { %940 = vmatmul.bf16.gmra.mxu1 %v858_v46 }
 0x6e3   :  { %v936_v47 = vpop.f32.mrf.mxu1 }
 0x6e4   :  { %v937_v48 = vadd.f32 %v2318_v44, %v936_v47 }
 0x6e6   :  { %v950_v49 = vadd.f32 %v937_v48, %v2866_v52 }
 0x6e8   :  { %v955_v35 = vsel %vm196_vm1, %v950_v49, 0.0 }
 0x6e9   :  { %956 = vadd.xlane.f32.xlu0 %v955_v35 }
 0x6eb   :  { %v938_v50 = vpop.f32.mrf.mxu1 }
 0x6ec   :  { %v939_v41 = vadd.f32 %v2318_v44, %v938_v50 }
 0x6ee   :  { %v951_v54 = vadd.f32 %v939_v41, %v2869_v53 }
 0x6f0   :  { %v958_v56 = vsel %vm196_vm1, %v951_v54, 0.0 }
 0x6f1   :  { %959 = vadd.xlane.f32.xlu1 %v958_v56  ;;  %v848_v51 = vpop.f32.mrf.mxu0 }
 0x6f2   :  { %v849_v58 = vadd.f32 %v2317_v20, %v848_v51  ;;  %v2956_v51 = vld [vmem:[%s3320_s13 + $0x3] ss:$0 sm:$0xff] }
 0x6f3   :  { %v941_v60 = vpop.f32.mrf.mxu1 }
 0x6f4   :  { %v856_v62 = vmax.f32 %v849_v58, 0.0  ;;  %v942_v3 = vadd.f32 %v2318_v44, %v941_v60 }
 0x6f6   :  { %v859_v63 = vpack.c.bf16 %v856_v62, %v856_v62  ;;  %v952_v0 = vadd.f32 %v942_v3, %v2882_v14 }
 0x6f8   :  { %945 = vmatmul.bf16.gmra.mxu1 %v859_v63  ;;  %v961_v52 = vsel %vm196_vm1, %v952_v0, 0.0 }
 0x6f9   :  { %962 = vadd.xlane.f32.xlu2 %v961_v52  ;;  %v850_v1 = vpop.f32.mrf.mxu0  ;;  %v2320_v52 = vld [vmem:[%s3320_s13 + $0x4] ss:$0 sm:$0xff] }
 0x6fb   :  { %v943_v2 = vpop.f32.mrf.mxu1 }
 0x6fc   :  { %v944_v4 = vadd.f32 %v2318_v44, %v943_v2 }
 0x6fe   :  { %v953_v53 = vadd.f32 %v944_v4, %v2885_v5 }
 0x700   :  { %v964_v8 = vsel %vm196_vm1, %v953_v53, 0.0 }
 0x701   :  { %965 = vadd.xlane.f32.xlu0 %v964_v8 }
 0x75c   :  { %v957_v9 = vpop.xlane.xlu0 %956 }
 0x75d   :  { %v970_v10 = vmul.f32 %v957_v9, %v2797_v42 }
 0x75f   :  { %v975_v11 = vsub.f32 %v950_v49, %v970_v10 }
 0x761   :  { %v980_v12 = vmul.f32 %v975_v11, %v975_v11 }
 0x763   :  { %v985_v13 = vsel %vm196_vm1, %v980_v12, 0.0 }
 0x764   :  { %v960_v14 = vpop.xlane.xlu1 %959  ;;  %986 = vadd.xlane.f32.xlu2 %v985_v13 }
 0x765   :  { %v971_v57 = vmul.f32 %v960_v14, %v2797_v42 }
 0x767   :  { %v2923_v61 = vsub.f32 %v951_v54, %v971_v57 }
 0x769   :  { %v981_v55 = vmul.f32 %v2923_v61, %v2923_v61 }
 0x76b   :  { %v988_v5 = vsel %vm196_vm1, %v981_v55, 0.0 }
 0x76c   :  { %989 = vadd.xlane.f32.xlu0 %v988_v5  ;;  %v963_v6 = vpop.xlane.xlu2 %962 }
 0x76d   :  { %v972_v18 = vmul.f32 %v963_v6, %v2797_v42 }
 0x76f   :  { %v2934_v24 = vsub.f32 %v952_v0, %v972_v18 }
 0x771   :  { %v982_v27 = vmul.f32 %v2934_v24, %v2934_v24 }
 0x773   :  { %v991_v28 = vsel %vm196_vm1, %v982_v27, 0.0 }
 0x774   :  { %v966_v15 = vpop.xlane.xlu0 %965 }
 0x775   :  { %v973_v16 = vmul.f32 %v966_v15, %v2797_v42  ;;  %v946_v17 = vpop.f32.mrf.mxu1 }
 0x776   :  { %v947_v19 = vadd.f32 %v2318_v44, %v946_v17 }
 0x777   :  { %v2930_v20 = vsub.f32 %v953_v53, %v973_v16 }
 0x778   :  { %v954_v22 = vadd.f32 %v947_v19, %v796_v45 }
 0x779   :  { %v983_v23 = vmul.f32 %v2930_v20, %v2930_v20 }
 0x77a   :  { %v967_v21 = vsel %vm196_vm1, %v954_v22, 0.0 }
 0x77b   :  { %968 = vadd.xlane.f32.xlu1 %v967_v21  ;;  %v994_v25 = vsel %vm196_vm1, %v983_v23, 0.0 }
 0x77c   :  { %995 = vadd.xlane.f32.xlu2 %v994_v25 }
 0x77d   :  { %v948_v26 = vpop.f32.mrf.mxu1 }
 0x783   :  { %992 = vadd.xlane.f32.xlu1 %v991_v28 }
 0x7d7   :  { %v987_v29 = vpop.xlane.xlu2 %986 }
 0x7d8   :  { %v1000_v30 = vmul.f32 %v987_v29, %v2797_v42 }
 0x7da   :  { %v1005_v59 = vadd.f32 1e-05, %v1000_v30 }
 0x7dc   :  { %2382 = vrsqrt.f32 %v1005_v59  ;;  %vm1016_vm9 = vweird.f32 %v1005_v59 }
 0x7df   :  { %v990_v33 = vpop.xlane.xlu0 %989 }
 0x7e0   :  { %v1001_v34 = vmul.f32 %v990_v33, %v2797_v42 }
 0x7e2   :  { %v2383_v31 = vpop.eup %2382  ;;  %v1006_v36 = vadd.f32 1e-05, %v1001_v34 }
 0x7e3   :  { %v1011_v37 = vmul.f32 %v2383_v31, %v1005_v59  ;;  %vm1017_vm8 = vweird.f32 %v2383_v31 }
 0x7e4   :  { %2384 = vrsqrt.f32 %v1006_v36  ;;  %vm1018_vm10 = vmor %vm1016_vm9, %vm1017_vm8  ;;  %vm1026_vm12 = vweird.f32 %v1006_v36 }
 0x7e5   :  { %v1012_v38 = vmul.f32 %v2383_v31, %v1011_v37 }
 0x7e7   :  { %v1013_v45 = vmul.f32 0.5, %v1012_v38 }
 0x7e9   :  { %v1014_v39 = vsub.f32 1.5, %v1013_v45 }
 0x7ea   :  { %v2385_v40 = vpop.eup %2384 }
 0x7eb   :  { %v1015_v43 = vmul.f32 %v2383_v31, %v1014_v39  ;;  %v1021_v46 = vmul.f32 %v2385_v40, %v1006_v36  ;;  %vm1027_vm11 = vweird.f32 %v2385_v40 }
 0x7ec   :  { %vm1028_vm13 = vmor %vm1026_vm12, %vm1027_vm11 }
 0x7ed   :  { %v1022_v44 = vmul.f32 %v2385_v40, %v1021_v46  ;;  %v1019_v48 = vsel %vm1018_vm10, %v2383_v31, %v1015_v43  ;;  %v2321_v43 = vld [vmem:[%s3315_s8 + $0x1] ss:$0 sm:$0xff] }
 0x7ee   :  { %v969_v47 = vpop.xlane.xlu1 %968  ;;  %v1060_v58 = vmul.f32 %v1019_v48, %v975_v11 }
 0x7ef   :  { %v1023_v49 = vmul.f32 0.5, %v1022_v44  ;;  %v974_v35 = vmul.f32 %v969_v47, %v2797_v42  ;;  %v996_v50 = vpop.xlane.xlu2 %995 }
 0x7f0   :  { %v1003_v41 = vmul.f32 %v996_v50, %v2797_v42  ;;  %v1068_v1 = vmul.f32 %v2956_v51, %v1060_v58 }
 0x7f1   :  { %v1024_v54 = vsub.f32 1.5, %v1023_v49  ;;  %v2951_v56 = vsub.f32 %v954_v22, %v974_v35 }
 0x7f2   :  { %v1008_v60 = vadd.f32 1e-05, %v1003_v41  ;;  %v2968_v11 = vadd.f32 %v2320_v52, %v1068_v1 }
 0x7f3   :  { %v1025_v62 = vmul.f32 %v2385_v40, %v1024_v54  ;;  %v984_v3 = vmul.f32 %v2951_v56, %v2951_v56 }
 0x7f4   :  { %2386 = vrsqrt.f32 %v1008_v60  ;;  %vm1046_vm15 = vweird.f32 %v1008_v60 }
 0x7f5   :  { %v1029_v63 = vsel %vm1028_vm13, %v2385_v40, %v1025_v62  ;;  %v997_v0 = vsel %vm196_vm1, %v984_v3, 0.0 }
 0x7f6   :  { %v1061_v2 = vmul.f32 %v1029_v63, %v2923_v61  ;;  %998 = vadd.xlane.f32.xlu0 %v997_v0  ;;  %v993_v4 = vpop.xlane.xlu1 %992 }
 0x7f7   :  { %v1002_v53 = vmul.f32 %v993_v4, %v2797_v42 }
 0x7f8   :  { %v1069_v8 = vmul.f32 %v2956_v51, %v1061_v2 }
 0x7f9   :  { %v1007_v9 = vadd.f32 1e-05, %v1002_v53 }
 0x7fa   :  { %v2387_v10 = vpop.eup %2386  ;;  %v2970_v12 = vadd.f32 %v2320_v52, %v1069_v8 }
 0x7fb   :  { %v1041_v13 = vmul.f32 %v2387_v10, %v1008_v60  ;;  %2388 = vrsqrt.f32 %v1007_v9  ;;  %vm1047_vm14 = vweird.f32 %v2387_v10  ;;  %vm1036_vm6 = vweird.f32 %v1007_v9 }
 0x7fc   :  { %v1093_v14 = vpack.c.bf16 %v2970_v12, %v2968_v11  ;;  %vm1048_vm4 = vmor %vm1046_vm15, %vm1047_vm14 }
 0x7fd   :  { %v1042_v57 = vmul.f32 %v2387_v10, %v1041_v13 }
 0x7fe   :  { %2171 = vmatmul.msk.bf16.vlgmr.msra.gmra.mxu3 %vm196_vm1, %v1093_v14 }
 0x7ff   :  { %v1043_v61 = vmul.f32 0.5, %v1042_v57 }
 0x801   :  { %v2389_v55 = vpop.eup %2388  ;;  %v1044_v5 = vsub.f32 1.5, %v1043_v61 }
 0x802   :  { %v1031_v6 = vmul.f32 %v2389_v55, %v1007_v9  ;;  %vm1037_vm5 = vweird.f32 %v2389_v55 }
 0x803   :  { %v1045_v15 = vmul.f32 %v2387_v10, %v1044_v5  ;;  %vm1038_vm7 = vmor %vm1036_vm6, %vm1037_vm5 }
 0x804   :  { %v1032_v16 = vmul.f32 %v2389_v55, %v1031_v6 }
 0x805   :  { %v1049_v17 = vsel %vm1048_vm4, %v2387_v10, %v1045_v15 }
 0x806   :  { %v1033_v18 = vmul.f32 0.5, %v1032_v16  ;;  %v1063_v22 = vmul.f32 %v1049_v17, %v2930_v20 }
 0x808   :  { %v1034_v19 = vsub.f32 1.5, %v1033_v18  ;;  %v1071_v26 = vmul.f32 %v2956_v51, %v1063_v22  ;;  %v2452_v18 = vld [vmem:[%s3318_s3] sm:$0xff] }
 0x80a   :  { %v1035_v23 = vmul.f32 %v2389_v55, %v1034_v19  ;;  %v2981_v29 = vadd.f32 %v2320_v52, %v1071_v26 }
 0x80c   :  { %v1039_v21 = vsel %vm1038_vm7, %v2389_v55, %v1035_v23 }
 0x80d   :  { %v1062_v25 = vmul.f32 %v1039_v21, %v2934_v24 }
 0x80f   :  { %v1070_v27 = vmul.f32 %v2956_v51, %v1062_v25 }
 0x811   :  { %v2979_v28 = vadd.f32 %v2320_v52, %v1070_v27  ;;  %v2453_v27 = vld [vmem:[%s3318_s3 + $0x8] sm:$0xff] }
 0x813   :  { %v1094_v32 = vpack.c.bf16 %v2981_v29, %v2979_v28 }
 0x815   :  { %2172 = vmatmul.msk.bf16.gmra.mxu3 %vm196_vm1, %v1094_v32 }
 0x869   :  { %v999_v20 = vpop.xlane.xlu0 %998 }
 0x86a   :  { %v1004_v30 = vmul.f32 %v999_v20, %v2797_v42  ;;  %v2454_v20 = vld [vmem:[%s3318_s3 + $0x10] sm:$0xff] }
 0x86c   :  { %v1009_v59 = vadd.f32 1e-05, %v1004_v30 }
 0x86e   :  { %2390 = vrsqrt.f32 %v1009_v59  ;;  %vm1056_vm9 = vweird.f32 %v1009_v59 }
 0x874   :  { %v2391_v7 = vpop.eup %2390 }
 0x875   :  { %v1051_v24 = vmul.f32 %v2391_v7, %v1009_v59  ;;  %vm1057_vm8 = vweird.f32 %v2391_v7 }
 0x876   :  { %vm1058_vm10 = vmor %vm1056_vm9, %vm1057_vm8 }
 0x877   :  { %v1052_v33 = vmul.f32 %v2391_v7, %v1051_v24 }
 0x879   :  { %v1053_v34 = vmul.f32 0.5, %v1052_v33 }
 0x87b   :  { %v1054_v31 = vsub.f32 1.5, %v1053_v34 }
 0x87d   :  { %v1055_v36 = vmul.f32 %v2391_v7, %v1054_v31 }
 0x87f   :  { %v1059_v37 = vsel %vm1058_vm10, %v2391_v7, %v1055_v36 }
 0x880   :  { %v1064_v38 = vmul.f32 %v1059_v37, %v2951_v56  ;;  %v2455_v37 = vld [vmem:[%s3318_s3 + $0x18] sm:$0xff] }
 0x881   :  { %v1136_v45 = vpop.f32.mrf.mxu3 }
 0x882   :  { %v1072_v39 = vmul.f32 %v2956_v51, %v1064_v38  ;;  %v1137_v47 = vadd.f32 %v2321_v43, %v1136_v45 }
 0x884   :  { %v2989_v40 = vadd.f32 %v2320_v52, %v1072_v39 }
 0x886   :  { %v1095_v46 = vpack.c.bf16 %v2989_v40, %v2989_v40 }
 0x888   :  { %2173 = vmatmul.msk.bf16.gmra.mxu3 %vm196_vm1, %v1095_v46 }
 0x889   :  { %v1138_v44 = vpop.f32.mrf.mxu3 }
 0x88a   :  { %v1139_v48 = vadd.f32 %v2321_v43, %v1138_v44 }
 0x88c   :  { %v2997_v49 = vpack.c.bf16 %v1139_v48, %v1137_v47 }
 0x88e   :  { %1156 = vrot.lane.b32.xlu0 %v2997_v49, %s2458_s1 }
 0x898   :  { %v1141_v35 = vpop.f32.mrf.mxu3 }
 0x899   :  { %v1142_v41 = vadd.f32 %v2321_v43, %v1141_v35  ;;  %v2456_v35 = vld [vmem:[%s3318_s3 + $0x20] sm:$0xff] }
 0x8a0   :  { %v1143_v50 = vpop.f32.mrf.mxu3 }
 0x8a1   :  { %v1144_v54 = vadd.f32 %v2321_v43, %v1143_v50 }
 0x8a3   :  { %v3001_v56 = vpack.c.bf16 %v1144_v54, %v1142_v41 }
 0x8a5   :  { %1158 = vrot.lane.b32.xlu2 %v3001_v56, %s2458_s1  ;;  %1374 = vrot.lane.b32.xlu0 %v3001_v56, %s2459_s2 }
 0x8ad   :  { %1372 = vrot.lane.b32.xlu2 %v2997_v49, %s2459_s2  ;;  %1368 = vrot.lane.b32.xlu0 %v3001_v56, %s2460_s29 }
 0x8ff   :  { %v1159_v3 = vpop.permute.xlu2 %1158 }
 0x900   :  { %v1157_v53 = vpop.permute.xlu0 %1156  ;;  %v1175_v9 = vsel %vm74_vm0, %v1159_v3, 0 }
 0x901   :  { %v1172_v14 = vsel %vm74_vm0, %v1157_v53, 0 }
 0x907   :  { %v1373_v63 = vpop.permute.xlu2 %1372 }
 0x908   :  { %v1388_v55 = vsel %vm74_vm0, %v1373_v63, 0 }
 0x90b   :  { %v1146_v51 = vpop.f32.mrf.mxu3 }
 0x90c   :  { %v1147_v58 = vadd.f32 %v2321_v43, %v1146_v51 }
 0x90e   :  { %v1152_v60 = vpack.c.bf16 %v1147_v58, %v1147_v58 }
 0x910   :  { %1160 = vrot.lane.b32.xlu1 %v1152_v60, %s2458_s1  ;;  %1370 = vrot.lane.b32.xlu2 %v1152_v60, %s2460_s29 }
 0x911   :  { %1491 = vrot.lane.b32.xlu0 %v1152_v60, %s2462_s24 }
 0x913   :  { %v1148_v62 = vpop.f32.mrf.mxu3 }
 0x917   :  { %v1375_v13 = vpop.permute.xlu0 %1374 }
 0x918   :  { %1376 = vrot.lane.b32.xlu1 %v1152_v60, %s2459_s2  ;;  %1275 = vrot.lane.b32.xlu2 %v1152_v60, %s2461_s6  ;;  %v1391_v57 = vsel %vm74_vm0, %v1375_v13, 0 }
 0x91f   :  { %v1369_v61 = vpop.permute.xlu0 %1368 }
 0x920   :  { %1366 = vrot.lane.b32.xlu1 %v2997_v49, %s2460_s29 }
 0x96a   :  { %v1371_v0 = vpop.permute.xlu2 %1370 }
 0x972   :  { %v1276_v52 = vpop.permute.xlu2 %1275 }
 0x973   :  { %v1289_v1 = vsel %vm368_vm3, %v1276_v52, 0 }
 0x974   :  { %1296 = vmatpush.bf16.msrb.mxu0 %v1289_v1 }
 0x982   :  { %v1161_v2 = vpop.permute.xlu1 %1160 }
 0x983   :  { %v1178_v4 = vsel %vm74_vm0, %v1161_v2, 0  ;;  %v1492_v5 = vpop.permute.xlu0 %1491 }
 0x984   :  { %1185 = vmatpush.bf16.xpose.msra.mxu2 %v1178_v4  ;;  %v1505_v6 = vsel %vm368_vm3, %v1492_v5, 0 }
 0x98a   :  { %v1377_v8 = vpop.permute.xlu1 %1376 }
 0x98b   :  { %v1394_v10 = vsel %vm74_vm0, %v1377_v8, 0 }
 0x98c   :  { %1186 = vmatpush.bf16.xpose.msra.mxu2 %v1175_v9  ;;  %2299 = vmatpush.bf16.xpose.msrb.mxu3 %v1394_v10 }
 0x992   :  { %v1367_v15 = vpop.permute.xlu1 %1366 }
 0x994   :  { %1187 = vmatpush.bf16.xpose.msra.mxu2 %v1172_v14  ;;  %2300 = vmatpush.bf16.xpose.msrb.mxu3 %v1391_v57 }
 0x99b   :  { %2174 = vmatmul.msk.bf16.vlgmr.msra.gmra.mxu2 %vm74_vm0, %v2997_v49 }
 0x99c   :  { %1401 = vmatpush.bf16.xpose.msrb.mxu2 %v1394_v10  ;;  %2301 = vmatpush.bf16.xpose.msrb.mxu3 %v1388_v55 }
 0x9a3   :  { %2190 = vmatmul.msk.bf16.vlgmr.msrb.gmra.mxu3 %vm74_vm0, %v1369_v61 }
 0x9a4   :  { %1402 = vmatpush.bf16.xpose.msrb.mxu2 %v1391_v57 }
 0x9ab   :  { %2175 = vmatmul.msk.bf16.gmra.mxu2 %vm74_vm0, %v3001_v56 }
 0x9ac   :  { %1403 = vmatpush.bf16.xpose.msrb.mxu2 %v1388_v55 }
 0x9b3   :  { %2191 = vmatmul.msk.bf16.gmra.mxu3 %vm74_vm0, %v1371_v0 }
 0x9b4   :  { %1512 = vmatpush.bf16.msra.mxu2 %v1505_v6 }
 0x9bb   :  { %2176 = vmatmul.msk.bf16.gmra.mxu2 %vm74_vm0, %v1152_v60 }
 0x9cb   :  { %2189 = vmatmul.msk.bf16.vlgmr.msrb.gmra.mxu2 %vm74_vm0, %v1367_v15 }
 0xa1e   :  { %v1189_v16 = vpop.f32.mrf.mxu2 }
 0xa1f   :  { %v1203_v17 = vmul.f32 0.25, %v1189_v16 }
 0xa21   :  { %v1208_v19 = vadd.f32 %v2452_v18, %v1203_v17 }
 0xa23   :  { %v1213_v22 = vsel %vm292_vm2, %v1208_v19, -inf }
 0xa24   :  { %1214 = vmax.xlane.f32.xlu2 %v1213_v22 }
 0xa26   :  { %v1191_v23 = vpop.f32.mrf.mxu2  ;;  %v1410_v21 = vpop.f32.mrf.mxu3 }
 0xa27   :  { %v1204_v25 = vmul.f32 0.25, %v1191_v23  ;;  %v1421_v26 = vmul.f32 0.25, %v1410_v21 }
 0xa29   :  { %v1209_v32 = vadd.f32 %v2453_v27, %v1204_v25  ;;  %v1426_v30 = vadd.f32 %v2454_v20, %v1421_v26 }
 0xa2b   :  { %v1216_v59 = vsel %vm292_vm2, %v1209_v32, -inf  ;;  %v1435_v7 = vsel %vm292_vm2, %v1426_v30, -inf }
 0xa2c   :  { %1217 = vmax.xlane.f32.xlu1 %v1216_v59  ;;  %1436 = vmax.xlane.f32.xlu0 %v1435_v7 }
 0xa2e   :  { %v1194_v24 = vpop.f32.mrf.mxu2  ;;  %v1412_v33 = vpop.f32.mrf.mxu3 }
 0xa2f   :  { %v1205_v34 = vmul.f32 0.25, %v1194_v24  ;;  %v1422_v31 = vmul.f32 0.25, %v1412_v33 }
 0xa31   :  { %v3046_v36 = vadd.f32 %v2454_v20, %v1205_v34  ;;  %v3051_v38 = vadd.f32 %v2455_v37, %v1422_v31 }
 0xa33   :  { %v1219_v45 = vsel %vm292_vm2, %v3046_v36, -inf  ;;  %v1438_v39 = vsel %vm292_vm2, %v3051_v38, -inf }
 0xa34   :  { %1220 = vmax.xlane.f32.xlu1 %v1219_v45  ;;  %1439 = vmax.xlane.f32.xlu2 %v1438_v39 }
 0xa36   :  { %v1196_v43 = vpop.f32.mrf.mxu2  ;;  %v1415_v46 = vpop.f32.mrf.mxu3 }
 0xa37   :  { %v1206_v44 = vmul.f32 0.25, %v1196_v43  ;;  %v1423_v47 = vmul.f32 0.25, %v1415_v46 }
 0xa39   :  { %v1211_v48 = vadd.f32 %v2455_v37, %v1206_v44  ;;  %v3060_v50 = vadd.f32 %v2456_v35, %v1423_v47 }
 0xa3b   :  { %v1222_v41 = vsel %vm292_vm2, %v1211_v48, -inf  ;;  %v1441_v54 = vsel %vm292_vm2, %v3060_v50, -inf }
 0xa3c   :  { %1223 = vmax.xlane.f32.xlu0 %v1222_v41  ;;  %1442 = vmax.xlane.f32.xlu1 %v1441_v54 }
 0xa3e   :  { %v1199_v51 = vpop.f32.mrf.mxu2  ;;  %v1417_v58 = vpop.f32.mrf.mxu3 }
 0xa3f   :  { %v1207_v0 = vmul.f32 0.25, %v1199_v51 }
 0xa41   :  { %v1212_v4 = vadd.f32 %v2456_v35, %v1207_v0 }
 0xa43   :  { %v1225_v9 = vsel %vm292_vm2, %v1212_v4, -inf }
 0xa46   :  { %v1201_v60 = vpop.f32.mrf.mxu2 }
 0xa4e   :  { %v1405_v62 = vpop.f32.mrf.mxu2 }
 0xa4f   :  { %v1419_v3 = vmul.f32 0.25, %v1405_v62 }
 0xa51   :  { %v1424_v63 = vadd.f32 %v2452_v18, %v1419_v3 }
 0xa53   :  { %v1429_v52 = vsel %vm292_vm2, %v1424_v63, -inf }
 0xa54   :  { %1430 = vmax.xlane.f32.xlu1 %v1429_v52 }
 0xa56   :  { %v1407_v1 = vpop.f32.mrf.mxu2 }
 0xa57   :  { %v1420_v2 = vmul.f32 0.25, %v1407_v1 }
 0xa59   :  { %v1425_v53 = vadd.f32 %v2453_v27, %v1420_v2 }
 0xa5b   :  { %v1432_v8 = vsel %vm292_vm2, %v1425_v53, -inf }
 0xa5c   :  { %1433 = vmax.xlane.f32.xlu0 %v1432_v8  ;;  %1226 = vmax.xlane.f32.xlu1 %v1225_v9 }
 0xa70   :  { %1489 = vrot.lane.b32.xlu0 %v3001_v56, %s2462_s24 }
 0xa78   :  { %1273 = vrot.lane.b32.xlu0 %v3001_v56, %s2461_s6 }
 0xa97   :  { %v1215_v10 = vpop.xlane.xlu2 %1214 }
 0xa98   :  { %v1228_v13 = vsub.f32 %v1208_v19, %v1215_v10 }
 0xa9a   :  { %v1233_v14 = vmul.f32 1.442695, %v1228_v13 }
 0xa9c   :  { %2392 = vpow2.f32 %v1233_v14 }
 0xa9f   :  { %v1218_v57 = vpop.xlane.xlu1 %1217  ;;  %v1437_v61 = vpop.xlane.xlu0 %1436 }
 0xaa0   :  { %v1229_v55 = vsub.f32 %v1209_v32, %v1218_v57  ;;  %v1446_v5 = vsub.f32 %v1426_v30, %v1437_v61 }
 0xaa2   :  { %v3072_v6 = vpop.eup %2392  ;;  %v1235_v15 = vmul.f32 1.442695, %v1229_v55  ;;  %v1453_v16 = vmul.f32 1.442695, %v1446_v5 }
 0xaa3   :  { %v1243_v17 = vsel %vm292_vm2, %v3072_v6, 0.0 }
 0xaa4   :  { %2394 = vpow2.f32 %v1235_v15  ;;  %1244 = vadd.xlane.f32.xlu2 %v1243_v17 }
 0xaa5   :  { %2396 = vpow2.f32 %v1453_v16 }
 0xaa7   :  { %v1221_v26 = vpop.xlane.xlu1 %1220  ;;  %v1440_v54 = vpop.xlane.xlu2 %1439 }
 0xaa8   :  { %v1447_v51 = vsub.f32 %v3051_v38, %v1440_v54  ;;  %v1230_v62 = vsub.f32 %v3046_v36, %v1221_v26 }
 0xaaa   :  { %v3076_v18 = vpop.eup %2394  ;;  %v1455_v58 = vmul.f32 1.442695, %v1447_v51  ;;  %v1237_v0 = vmul.f32 1.442695, %v1230_v62 }
 0xaab   :  { %v3078_v56 = vpop.eup %2396  ;;  %v1246_v19 = vsel %vm292_vm2, %v3076_v18, 0.0 }
 0xaac   :  { %1247 = vadd.xlane.f32.xlu1 %v1246_v19  ;;  %v1465_v22 = vsel %vm292_vm2, %v3078_v56, 0.0 }
 0xaad   :  { %1466 = vadd.xlane.f32.xlu0 %v1465_v22 }
 0xaaf   :  { %v1224_v23 = vpop.xlane.xlu0 %1223  ;;  %v1443_v20 = vpop.xlane.xlu1 %1442 }
 0xab0   :  { %v1231_v21 = vsub.f32 %v1211_v48, %v1224_v23  ;;  %v1448_v60 = vsub.f32 %v3060_v50, %v1443_v20 }
 0xab2   :  { %v1239_v25 = vmul.f32 1.442695, %v1231_v21  ;;  %v1457_v3 = vmul.f32 1.442695, %v1448_v60 }
 0xab4   :  { %2398 = vpow2.f32 %v1239_v25 }
 0xaba   :  { %v3084_v27 = vpop.eup %2398 }
 0xabb   :  { %v1252_v32 = vsel %vm292_vm2, %v3084_v27, 0.0 }
 0xabc   :  { %1253 = vadd.xlane.f32.xlu0 %v1252_v32 }
 0xac7   :  { %v1431_v30 = vpop.xlane.xlu1 %1430 }
 0xac8   :  { %v1444_v59 = vsub.f32 %v1424_v63, %v1431_v30 }
 0xaca   :  { %v1449_v7 = vmul.f32 1.442695, %v1444_v59 }
 0xacc   :  { %2400 = vpow2.f32 %v1449_v7 }
 0xacf   :  { %v1227_v24 = vpop.xlane.xlu1 %1226  ;;  %v1434_v33 = vpop.xlane.xlu0 %1433 }
 0xad0   :  { %v1232_v34 = vsub.f32 %v1212_v4, %v1227_v24  ;;  %v1445_v31 = vsub.f32 %v1425_v53, %v1434_v33 }
 0xad2   :  { %v2401_v37 = vpop.eup %2400  ;;  %v1241_v45 = vmul.f32 1.442695, %v1232_v34  ;;  %v1451_v39 = vmul.f32 1.442695, %v1445_v31 }
 0xad3   :  { %v1459_v43 = vsel %vm292_vm2, %v2401_v37, 0.0 }
 0xad4   :  { %2402 = vpow2.f32 %v1241_v45  ;;  %1460 = vadd.xlane.f32.xlu2 %v1459_v43 }
 0xad5   :  { %2404 = vpow2.f32 %v1451_v39 }
 0xad6   :  { %2406 = vpow2.f32 %v1455_v58 }
 0xad7   :  { %2408 = vpow2.f32 %v1457_v3 }
 0xad8   :  { %2410 = vpow2.f32 %v1237_v0 }
 0xada   :  { %v3089_v46 = vpop.eup %2402 }
 0xadb   :  { %v2405_v44 = vpop.eup %2404  ;;  %v1255_v47 = vsel %vm292_vm2, %v3089_v46, 0.0 }
 0xadc   :  { %1256 = vadd.xlane.f32.xlu0 %v1255_v47  ;;  %v1462_v48 = vsel %vm292_vm2, %v2405_v44, 0.0  ;;  %v2407_v63 = vpop.eup %2406  ;;  %v2288_v47 = vld [vmem:[%s3319_s9 + $0x18] sm:$0xff] }
 0xadd   :  { %1463 = vadd.xlane.f32.xlu1 %v1462_v48  ;;  %v1468_v52 = vsel %vm292_vm2, %v2407_v63, 0.0  ;;  %v2409_v1 = vpop.eup %2408 }
 0xade   :  { %v2411_v2 = vpop.eup %2410 }
 0xadf   :  { %v1249_v38 = vsel %vm292_vm2, %v2411_v2, 0.0 }
 0xae2   :  { %v1490_v35 = vpop.permute.xlu0 %1489 }
 0xae3   :  { %1513 = vmatpush.bf16.msra.mxu2 %v1490_v35 }
 0xaea   :  { %v1274_v41 = vpop.permute.xlu0 %1273 }
 0xaeb   :  { %1297 = vmatpush.bf16.msrb.mxu0 %v1274_v41 }
 0xaec   :  { %1271 = vrot.lane.b32.xlu2 %v2997_v49, %s2461_s6 }
 0xaf6   :  { %1487 = vrot.lane.b32.xlu1 %v2997_v49, %s2462_s24  ;;  %v1471_v49 = vsel %vm292_vm2, %v2409_v1, 0.0 }
 0xb15   :  { %1469 = vadd.xlane.f32.xlu2 %v1468_v52 }
 0xb17   :  { %v1245_v4 = vpop.xlane.xlu2 %1244 }
 0xb1d   :  { %1472 = vadd.xlane.f32.xlu2 %v1471_v49 }
 0xb1f   :  { %v1248_v50 = vpop.xlane.xlu1 %1247 }
 0xb20   :  { %1250 = vadd.xlane.f32.xlu1 %v1249_v38  ;;  %2412 = vrcp.f32 %v1248_v50  ;;  %v2322_v50 = vld [vmem:[%s3320_s13 + $0x6] ss:$0 sm:$0xff] }
 0xb21   :  { %2414 = vrcp.f32 %v1245_v4 }
 0xb26   :  { %v2413_v53 = vpop.eup %2412 }
 0xb27   :  { %v2415_v8 = vpop.eup %2414  ;;  %v1264_v9 = vmul.f32 %v2413_v53, %v3076_v18  ;;  %v1467_v18 = vpop.xlane.xlu0 %1466 }
 0xb28   :  { %v1263_v10 = vmul.f32 %v2415_v8, %v3072_v6 }
 0xb2a   :  { %v1268_v14 = vpack.c.bf16 %v1264_v9, %v1263_v10 }
 0xb2f   :  { %v1254_v23 = vpop.xlane.xlu0 %1253 }
 0xb47   :  { %v1461_v36 = vpop.xlane.xlu2 %1460 }
 0xb4f   :  { %v1272_v13 = vpop.permute.xlu2 %1271  ;;  %v1257_v34 = vpop.xlane.xlu0 %1256 }
 0xb50   :  { %1298 = vmatpush.bf16.msrb.mxu0 %v1272_v13  ;;  %v1464_v57 = vpop.xlane.xlu1 %1463 }
 0xb51   :  { %2416 = vrcp.f32 %v1464_v57 }
 0xb52   :  { %2418 = vrcp.f32 %v1461_v36 }
 0xb53   :  { %2177 = vmatmul.msk.bf16.vlgmr.msrb.gmra.mxu0 %vm292_vm2, %v1268_v14  ;;  %2420 = vrcp.f32 %v1467_v18 }
 0xb54   :  { %1558 = vmatpush.bf16.msra.mxu0 %v2288_v47 }
 0xb57   :  { %v2417_v61 = vpop.eup %2416 }
 0xb58   :  { %v2419_v55 = vpop.eup %2418  ;;  %v1480_v5 = vmul.f32 %v2417_v61, %v2405_v44  ;;  %v2287_v44 = vld [vmem:[%s3319_s9 + $0x10] sm:$0xff] }
 0xb59   :  { %v1479_v15 = vmul.f32 %v2419_v55, %v2401_v37  ;;  %v2421_v19 = vpop.eup %2420  ;;  %1342 = vmatpush.bf16.msrb.mxu1 %v2287_v44 }
 0xb5a   :  { %v1481_v21 = vmul.f32 %v2421_v19, %v3078_v56 }
 0xb5b   :  { %v1484_v17 = vpack.c.bf16 %v1480_v5, %v1479_v15 }
 0xb68   :  { %v1488_v16 = vpop.permute.xlu1 %1487 }
 0xb69   :  { %1514 = vmatpush.bf16.msra.mxu2 %v1488_v16 }
 0xb6c   :  { %2192 = vmatmul.msk.bf16.vlgmr.msra.gmra.mxu2 %vm292_vm2, %v1484_v17 }
 0xb88   :  { %v1470_v6 = vpop.xlane.xlu2 %1469 }
 0xb89   :  { %2422 = vrcp.f32 %v1470_v6 }
 0xb8a   :  { %2424 = vrcp.f32 %v1254_v23 }
 0xb8f   :  { %v2423_v22 = vpop.eup %2422 }
 0xb90   :  { %v1482_v25 = vmul.f32 %v2423_v22, %v2407_v63  ;;  %v1473_v26 = vpop.xlane.xlu2 %1472  ;;  %v2425_v30 = vpop.eup %2424 }
 0xb91   :  { %v1266_v33 = vmul.f32 %v2425_v30, %v3084_v27 }
 0xb92   :  { %v1485_v32 = vpack.c.bf16 %v1482_v25, %v1481_v21 }
 0xb93   :  { %v1251_v20 = vpop.xlane.xlu1 %1250 }
 0xb94   :  { %2426 = vrcp.f32 %v1251_v20  ;;  %2193 = vmatmul.msk.bf16.gmra.mxu2 %vm292_vm2, %v1485_v32 }
 0xb95   :  { %2428 = vrcp.f32 %v1473_v26 }
 0xb96   :  { %2430 = vrcp.f32 %v1257_v34 }
 0xb9a   :  { %v2427_v59 = vpop.eup %2426 }
 0xb9b   :  { %v2429_v7 = vpop.eup %2428  ;;  %v1265_v24 = vmul.f32 %v2427_v59, %v2411_v2 }
 0xb9c   :  { %v1483_v37 = vmul.f32 %v2429_v7, %v2409_v1  ;;  %v2431_v45 = vpop.eup %2430 }
 0xb9d   :  { %v1269_v31 = vpack.c.bf16 %v1266_v33, %v1265_v24  ;;  %v1267_v39 = vmul.f32 %v2431_v45, %v3089_v46 }
 0xb9e   :  { %v1486_v56 = vpack.c.bf16 %v1483_v37, %v1483_v37 }
 0xb9f   :  { %2178 = vmatmul.msk.bf16.gmra.mxu0 %vm292_vm2, %v1269_v31  ;;  %v1270_v43 = vpack.c.bf16 %v1267_v39, %v1267_v39 }
 0xba4   :  { %2194 = vmatmul.msk.bf16.gmra.mxu2 %vm292_vm2, %v1486_v56 }
 0xbaf   :  { %2179 = vmatmul.msk.bf16.gmra.mxu0 %vm292_vm2, %v1270_v43 }
 0xbd0   :  { %v1300_v27 = vpop.f32.mrf.mxu0 }
 0xbd8   :  { %v1302_v48 = vpop.f32.mrf.mxu0 }
 0xbd9   :  { %v1314_v35 = vpack.c.bf16 %v1302_v48, %v1300_v27 }
 0xbdb   :  { %2186 = vmatmul.msk.bf16.vlgmr.msrb.gmra.mxu1 %vm74_vm0, %v1314_v35 }
 0xbef   :  { %v1516_v41 = vpop.f32.mrf.mxu2 }
 0xbf7   :  { %v1518_v46 = vpop.f32.mrf.mxu2 }
 0xbf8   :  { %v1530_v54 = vpack.c.bf16 %v1518_v46, %v1516_v41 }
 0xbfa   :  { %2201 = vmatmul.msk.bf16.vlgmr.msra.gmra.mxu0 %vm74_vm0, %v1530_v54 }
 0xc17   :  { %v1521_v51 = vpop.f32.mrf.mxu2 }
 0xc1c   :  { %v1305_v58 = vpop.f32.mrf.mxu0 }
 0xc1f   :  { %v1523_v60 = vpop.f32.mrf.mxu2 }
 0xc20   :  { %v1531_v62 = vpack.c.bf16 %v1523_v60, %v1521_v51 }
 0xc22   :  { %2202 = vmatmul.msk.bf16.gmra.mxu0 %vm74_vm0, %v1531_v62 }
 0xc24   :  { %v1307_v3 = vpop.f32.mrf.mxu0 }
 0xc25   :  { %v1315_v63 = vpack.c.bf16 %v1307_v3, %v1305_v58 }
 0xc27   :  { %2187 = vmatmul.msk.bf16.gmra.mxu1 %vm74_vm0, %v1315_v63  ;;  %v1526_v0 = vpop.f32.mrf.mxu2 }
 0xc28   :  { %v1532_v2 = vpack.c.bf16 %v1526_v0, %v1526_v0 }
 0xc2c   :  { %v1310_v52 = vpop.f32.mrf.mxu0 }
 0xc2d   :  { %v1316_v38 = vpack.c.bf16 %v1310_v52, %v1310_v52  ;;  %v2290_v52 = vld [vmem:[%s3321_s10 + $0x18] sm:$0xff] }
 0xc2e   :  { %1750 = vmatpush.bf16.msra.mxu1 %v2290_v52 }
 0xc2f   :  { %v1528_v1 = vpop.f32.mrf.mxu2 }
 0xc32   :  { %2203 = vmatmul.msk.bf16.gmra.mxu0 %vm74_vm0, %v1532_v2 }
 0xc34   :  { %v1312_v49 = vpop.f32.mrf.mxu0 }
 0xc37   :  { %2188 = vmatmul.msk.bf16.gmra.mxu1 %vm74_vm0, %v1316_v38  ;;  %v2289_v38 = vld [vmem:[%s3321_s10 + $0x10] sm:$0xff] }
 0xc38   :  { %1751 = vmatpush.bf16.msra.mxu1 %v2289_v38 }
 0xc58   :  { %v1344_v4 = vpop.f32.mrf.mxu1 }
 0xc59   :  { %v1361_v36 = vadd.f32 %v2322_v50, %v1344_v4 }
 0xc60   :  { %v1346_v10 = vpop.f32.mrf.mxu1 }
 0xc61   :  { %v1362_v14 = vadd.f32 %v2322_v50, %v1346_v10 }
 0xc77   :  { %v1560_v53 = vpop.f32.mrf.mxu0 }
 0xc78   :  { %v1574_v8 = vadd.f32 %v1560_v53, %v1361_v36 }
 0xc7a   :  { %v1579_v9 = vadd.f32 %v1574_v8, %v2968_v11 }
 0xc7c   :  { %v1584_v13 = vsel %vm196_vm1, %v1579_v9, 0.0 }
 0xc7d   :  { %1585 = vadd.xlane.f32.xlu2 %v1584_v13 }
 0xc7f   :  { %v1562_v57 = vpop.f32.mrf.mxu0 }
 0xc80   :  { %v1575_v61 = vadd.f32 %v1562_v57, %v1362_v14 }
 0xc82   :  { %v1580_v55 = vadd.f32 %v1575_v61, %v2970_v12 }
 0xc84   :  { %v1587_v5 = vsel %vm196_vm1, %v1580_v55, 0.0 }
 0xc85   :  { %1588 = vadd.xlane.f32.xlu0 %v1587_v5 }
 0xc9f   :  { %v1565_v15 = vpop.f32.mrf.mxu0 }
 0xca4   :  { %v1349_v16 = vpop.f32.mrf.mxu1 }
 0xca5   :  { %v1363_v17 = vadd.f32 %v2322_v50, %v1349_v16 }
 0xca7   :  { %v1576_v18 = vadd.f32 %v1565_v15, %v1363_v17  ;;  %v1567_v6 = vpop.f32.mrf.mxu0  ;;  %v3173_v17 = vld [vmem:[%s3320_s13 + $0x7] ss:$0 sm:$0xff] }
 0xca9   :  { %v1581_v19 = vadd.f32 %v1576_v18, %v2979_v28 }
 0xcab   :  { %v1590_v11 = vsel %vm196_vm1, %v1581_v19, 0.0 }
 0xcac   :  { %v1351_v22 = vpop.f32.mrf.mxu1  ;;  %1591 = vadd.xlane.f32.xlu2 %v1590_v11  ;;  %v3178_v11 = vld [vmem:[%s3320_s13 + $0x8] ss:$0 sm:$0xff] }
 0xcad   :  { %v1364_v23 = vadd.f32 %v2322_v50, %v1351_v22 }
 0xcaf   :  { %v1577_v21 = vadd.f32 %v1567_v6, %v1364_v23  ;;  %v1570_v25 = vpop.f32.mrf.mxu0 }
 0xcb1   :  { %v1582_v26 = vadd.f32 %v1577_v21, %v2981_v29 }
 0xcb3   :  { %v1593_v12 = vsel %vm196_vm1, %v1582_v26, 0.0 }
 0xcb4   :  { %v1354_v32 = vpop.f32.mrf.mxu1  ;;  %1594 = vadd.xlane.f32.xlu1 %v1593_v12 }
 0xcb5   :  { %v1365_v20 = vadd.f32 %v2322_v50, %v1354_v32 }
 0xcb7   :  { %v1578_v30 = vadd.f32 %v1570_v25, %v1365_v20  ;;  %v1572_v59 = vpop.f32.mrf.mxu0 }
 0xcb9   :  { %v1583_v7 = vadd.f32 %v1578_v30, %v2989_v40 }
 0xcbb   :  { %v1596_v28 = vsel %vm196_vm1, %v1583_v7, 0.0 }
 0xcbc   :  { %v1356_v24 = vpop.f32.mrf.mxu1  ;;  %1597 = vadd.xlane.f32.xlu0 %v1596_v28 }
 0xcf0   :  { %v1586_v33 = vpop.xlane.xlu2 %1585 }
 0xcf1   :  { %v1599_v34 = vmul.f32 %v1586_v33, %v2797_v42 }
 0xcf3   :  { %v1604_v31 = vsub.f32 %v1579_v9, %v1599_v34 }
 0xcf5   :  { %v1609_v37 = vmul.f32 %v1604_v31, %v1604_v31 }
 0xcf7   :  { %v1614_v29 = vsel %vm196_vm1, %v1609_v37, 0.0 }
 0xcf8   :  { %v1589_v56 = vpop.xlane.xlu0 %1588  ;;  %1615 = vadd.xlane.f32.xlu2 %v1614_v29 }
 0xcf9   :  { %v1600_v45 = vmul.f32 %v1589_v56, %v2797_v42 }
 0xcfb   :  { %v1605_v39 = vsub.f32 %v1580_v55, %v1600_v45 }
 0xcfd   :  { %v1610_v43 = vmul.f32 %v1605_v39, %v1605_v39 }
 0xcff   :  { %v1617_v44 = vsel %vm196_vm1, %v1610_v43, 0.0 }
 0xd00   :  { %1618 = vadd.xlane.f32.xlu1 %v1617_v44 }
 0xd1f   :  { %v1592_v40 = vpop.xlane.xlu2 %1591 }
 0xd20   :  { %v1601_v27 = vmul.f32 %v1592_v40, %v2797_v42 }
 0xd22   :  { %v3145_v47 = vsub.f32 %v1581_v19, %v1601_v27  ;;  %v2298_v27 = vld [vmem:[%s3322_s12 + $0x78] sm:$0xff] }
 0xd23   :  { %1843 = vmatpush.bf16.msra.mxu3 %v2298_v27 }
 0xd24   :  { %v1611_v48 = vmul.f32 %v3145_v47, %v3145_v47 }
 0xd26   :  { %v1620_v35 = vsel %vm196_vm1, %v1611_v48, 0.0 }
 0xd27   :  { %v1595_v41 = vpop.xlane.xlu1 %1594  ;;  %1621 = vadd.xlane.f32.xlu0 %v1620_v35 }
 0xd28   :  { %v1602_v46 = vmul.f32 %v1595_v41, %v2797_v42  ;;  %v2297_v41 = vld [vmem:[%s3322_s12 + $0x70] sm:$0xff] }
 0xd29   :  { %1844 = vmatpush.bf16.msra.mxu3 %v2297_v41 }
 0xd2a   :  { %v3151_v54 = vsub.f32 %v1582_v26, %v1602_v46 }
 0xd2c   :  { %v1612_v51 = vmul.f32 %v3151_v54, %v3151_v54 }
 0xd2e   :  { %v1623_v58 = vsel %vm196_vm1, %v1612_v51, 0.0 }
 0xd2f   :  { %1624 = vadd.xlane.f32.xlu2 %v1623_v58  ;;  %v1598_v60 = vpop.xlane.xlu0 %1597 }
 0xd30   :  { %v1603_v62 = vmul.f32 %v1598_v60, %v2797_v42 }
 0xd32   :  { %v3157_v3 = vsub.f32 %v1583_v7, %v1603_v62 }
 0xd34   :  { %v1613_v63 = vmul.f32 %v3157_v3, %v3157_v3 }
 0xd36   :  { %v1626_v0 = vsel %vm196_vm1, %v1613_v63, 0.0  ;;  %v2296_v63 = vld [vmem:[%s3322_s12 + $0x68] sm:$0xff] }
 0xd37   :  { %1627 = vadd.xlane.f32.xlu1 %v1626_v0  ;;  %1845 = vmatpush.bf16.msra.mxu3 %v2296_v63 }
 0xd6b   :  { %v1616_v1 = vpop.xlane.xlu2 %1615 }
 0xd6c   :  { %v1629_v2 = vmul.f32 %v1616_v1, %v2797_v42 }
 0xd6e   :  { %v1634_v49 = vadd.f32 1e-05, %v1629_v2 }
 0xd70   :  { %2432 = vrsqrt.f32 %v1634_v49  ;;  %vm1645_vm3 = vweird.f32 %v1634_v49 }
 0xd73   :  { %v1619_v4 = vpop.xlane.xlu1 %1618 }
 0xd74   :  { %v1630_v50 = vmul.f32 %v1619_v4, %v2797_v42 }
 0xd76   :  { %v2433_v36 = vpop.eup %2432  ;;  %v1635_v53 = vadd.f32 1e-05, %v1630_v50 }
 0xd77   :  { %v1640_v8 = vmul.f32 %v2433_v36, %v1634_v49  ;;  %vm1646_vm0 = vweird.f32 %v2433_v36 }
 0xd78   :  { %2434 = vrsqrt.f32 %v1635_v53  ;;  %vm1647_vm11 = vmor %vm1645_vm3, %vm1646_vm0  ;;  %vm1655_vm13 = vweird.f32 %v1635_v53 }
 0xd79   :  { %v1641_v9 = vmul.f32 %v2433_v36, %v1640_v8 }
 0xd7b   :  { %v1642_v10 = vmul.f32 0.5, %v1641_v9 }
 0xd7d   :  { %v1643_v13 = vsub.f32 1.5, %v1642_v10 }
 0xd7e   :  { %v2435_v14 = vpop.eup %2434 }
 0xd7f   :  { %v1644_v57 = vmul.f32 %v2433_v36, %v1643_v13  ;;  %v1650_v61 = vmul.f32 %v2435_v14, %v1635_v53  ;;  %vm1656_vm12 = vweird.f32 %v2435_v14 }
 0xd80   :  { %vm1657_vm14 = vmor %vm1655_vm13, %vm1656_vm12 }
 0xd81   :  { %v1651_v55 = vmul.f32 %v2435_v14, %v1650_v61  ;;  %v1648_v5 = vsel %vm1647_vm11, %v2433_v36, %v1644_v57  ;;  %v2294_v57 = vld [vmem:[%s3322_s12 + $0x58] sm:$0xff]  ;;  %v2293_v61 = vld [vmem:[%s3322_s12 + $0x50] sm:$0xff] }
 0xd82   :  { %v1689_v18 = vmul.f32 %v1648_v5, %v1604_v31 }
 0xd83   :  { %v1652_v15 = vmul.f32 0.5, %v1651_v55  ;;  %v2291_v55 = vld [vmem:[%s3322_s12 + $0x40] sm:$0xff] }
 0xd84   :  { %v1697_v22 = vmul.f32 %v3173_v17, %v1689_v18 }
 0xd85   :  { %v1653_v16 = vsub.f32 1.5, %v1652_v15  ;;  %v2325_v15 = vld [vmem:[%s3323_s11 + $0x1] ss:$0 sm:$0xff] }
 0xd86   :  { %v3183_v25 = vadd.f32 %v3178_v11, %v1697_v22 }
 0xd87   :  { %v1654_v6 = vmul.f32 %v2435_v14, %v1653_v16 }
 0xd89   :  { %v1658_v19 = vsel %vm1657_vm14, %v2435_v14, %v1654_v6 }
 0xd8a   :  { %v1690_v23 = vmul.f32 %v1658_v19, %v1605_v39 }
 0xd8c   :  { %v1698_v21 = vmul.f32 %v3173_v17, %v1690_v23 }
 0xd8e   :  { %v3186_v26 = vadd.f32 %v3178_v11, %v1698_v21 }
 0xd90   :  { %v1710_v12 = vpack.c.bf16 %v3186_v26, %v3183_v25 }
 0xd92   :  { %2217 = vmatmul.msk.bf16.vlgmr.msra.gmra.mxu1 %vm196_vm1, %v1710_v12 }
 0xd9a   :  { %v1622_v32 = vpop.xlane.xlu0 %1621 }
 0xd9b   :  { %v1631_v20 = vmul.f32 %v1622_v32, %v2797_v42 }
 0xd9d   :  { %v1636_v30 = vadd.f32 1e-05, %v1631_v20 }
 0xd9f   :  { %2436 = vrsqrt.f32 %v1636_v30  ;;  %vm1665_vm4 = vweird.f32 %v1636_v30 }
 0xda2   :  { %v1625_v59 = vpop.xlane.xlu2 %1624 }
 0xda3   :  { %v1632_v7 = vmul.f32 %v1625_v59, %v2797_v42 }
 0xda5   :  { %v2437_v28 = vpop.eup %2436  ;;  %v1637_v24 = vadd.f32 1e-05, %v1632_v7 }
 0xda6   :  { %v1660_v33 = vmul.f32 %v2437_v28, %v1636_v30  ;;  %vm1666_vm15 = vweird.f32 %v2437_v28 }
 0xda7   :  { %2438 = vrsqrt.f32 %v1637_v24  ;;  %vm1667_vm5 = vmor %vm1665_vm4, %vm1666_vm15  ;;  %vm1675_vm7 = vweird.f32 %v1637_v24 }
 0xda8   :  { %v1661_v34 = vmul.f32 %v2437_v28, %v1660_v33 }
 0xdaa   :  { %v1662_v31 = vmul.f32 0.5, %v1661_v34  ;;  %v1628_v37 = vpop.xlane.xlu1 %1627 }
 0xdab   :  { %v1633_v29 = vmul.f32 %v1628_v37, %v2797_v42  ;;  %v2326_v37 = vld [vmem:[%s3320_s13 + $0xb] ss:$0 sm:$0xff] }
 0xdac   :  { %v1663_v56 = vsub.f32 1.5, %v1662_v31 }
 0xdad   :  { %v2439_v45 = vpop.eup %2438  ;;  %v1638_v39 = vadd.f32 1e-05, %v1633_v29 }
 0xdae   :  { %v1664_v43 = vmul.f32 %v2437_v28, %v1663_v56  ;;  %v1670_v44 = vmul.f32 %v2439_v45, %v1637_v24  ;;  %vm1676_vm6 = vweird.f32 %v2439_v45 }
 0xdaf   :  { %2440 = vrsqrt.f32 %v1638_v39  ;;  %vm1677_vm8 = vmor %vm1675_vm7, %vm1676_vm6  ;;  %vm1685_vm10 = vweird.f32 %v1638_v39 }
 0xdb0   :  { %v1671_v40 = vmul.f32 %v2439_v45, %v1670_v44  ;;  %v1668_v48 = vsel %vm1667_vm5, %v2437_v28, %v1664_v43 }
 0xdb1   :  { %v1691_v58 = vmul.f32 %v1668_v48, %v3145_v47  ;;  %v2295_v47 = vld [vmem:[%s3322_s12 + $0x60] sm:$0xff] }
 0xdb2   :  { %v1672_v35 = vmul.f32 0.5, %v1671_v40  ;;  %1846 = vmatpush.bf16.msra.mxu3 %v2295_v47 }
 0xdb3   :  { %v1699_v2 = vmul.f32 %v3173_v17, %v1691_v58 }
 0xdb4   :  { %v1673_v46 = vsub.f32 1.5, %v1672_v35 }
 0xdb5   :  { %v2441_v51 = vpop.eup %2440  ;;  %v1707_v50 = vadd.f32 %v3178_v11, %v1699_v2 }
 0xdb6   :  { %v1674_v60 = vmul.f32 %v2439_v45, %v1673_v46  ;;  %v1680_v62 = vmul.f32 %v2441_v51, %v1638_v39  ;;  %vm1686_vm9 = vweird.f32 %v2441_v51  ;;  %1847 = vmatpush.bf16.msra.mxu3 %v2294_v57 }
 0xdb7   :  { %vm1687_vm0 = vmor %vm1685_vm10, %vm1686_vm9 }
 0xdb8   :  { %v1678_v0 = vsel %vm1677_vm8, %v2439_v45, %v1674_v60  ;;  %v1681_v52 = vmul.f32 %v2441_v51, %v1680_v62 }
 0xdb9   :  { %v1692_v1 = vmul.f32 %v1678_v0, %v3151_v54 }
 0xdba   :  { %v1682_v49 = vmul.f32 0.5, %v1681_v52  ;;  %1848 = vmatpush.bf16.msra.mxu3 %v2293_v61 }
 0xdbb   :  { %v1700_v38 = vmul.f32 %v3173_v17, %v1692_v1 }
 0xdbc   :  { %v1683_v4 = vsub.f32 1.5, %v1682_v49 }
 0xdbd   :  { %v1708_v36 = vadd.f32 %v3178_v11, %v1700_v38 }
 0xdbe   :  { %v1684_v53 = vmul.f32 %v2441_v51, %v1683_v4 }
 0xdbf   :  { %v1711_v54 = vpack.c.bf16 %v1708_v36, %v1707_v50 }
 0xdc0   :  { %v1688_v8 = vsel %vm1687_vm0, %v2441_v51, %v1684_v53 }
 0xdc1   :  { %v1693_v9 = vmul.f32 %v1688_v8, %v3157_v3  ;;  %2218 = vmatmul.msk.bf16.gmra.mxu1 %vm196_vm1, %v1711_v54  ;;  %v2292_v3 = vld [vmem:[%s3322_s12 + $0x48] sm:$0xff] }
 0xdc2   :  { %1849 = vmatpush.bf16.msra.mxu3 %v2292_v3 }
 0xdc3   :  { %v1701_v10 = vmul.f32 %v3173_v17, %v1693_v9 }
 0xdc5   :  { %v1709_v13 = vadd.f32 %v3178_v11, %v1701_v10 }
 0xdc6   :  { %1850 = vmatpush.bf16.msra.mxu3 %v2291_v55 }
 0xdc7   :  { %v1712_v14 = vpack.c.bf16 %v1709_v13, %v1709_v13 }
 0xdd1   :  { %2219 = vmatmul.msk.bf16.gmra.mxu1 %vm196_vm1, %v1712_v14 }
 0xe0f   :  { %v1753_v5 = vpop.f32.mrf.mxu1 }
 0xe10   :  { %v1754_v16 = vadd.f32 %v2325_v15, %v1753_v5 }
 0xe12   :  { %v1767_v6 = vmax.f32 %v1754_v16, 0.0 }
 0xe17   :  { %v1755_v17 = vpop.f32.mrf.mxu1 }
 0xe18   :  { %v1756_v18 = vadd.f32 %v2325_v15, %v1755_v17 }
 0xe1a   :  { %v1768_v19 = vmax.f32 %v1756_v18, 0.0 }
 0xe1c   :  { %v1772_v11 = vpack.c.bf16 %v1768_v19, %v1767_v6 }
 0xe1e   :  { %1851 = vmatmul.bf16.vlgmr.msra.gmra.mxu3 %v1772_v11 }
 0xe3e   :  { %v1758_v22 = vpop.f32.mrf.mxu1 }
 0xe3f   :  { %v1759_v23 = vadd.f32 %v2325_v15, %v1758_v22 }
 0xe41   :  { %v1769_v32 = vmax.f32 %v1759_v23, 0.0 }
 0xe46   :  { %v1760_v21 = vpop.f32.mrf.mxu1 }
 0xe47   :  { %v1761_v12 = vadd.f32 %v2325_v15, %v1760_v21 }
 0xe49   :  { %v1770_v20 = vmax.f32 %v1761_v12, 0.0 }
 0xe4b   :  { %v1773_v30 = vpack.c.bf16 %v1770_v20, %v1769_v32 }
 0xe4d   :  { %1856 = vmatmul.bf16.gmra.mxu3 %v1773_v30 }
 0xe4e   :  { %v1763_v59 = vpop.f32.mrf.mxu1 }
 0xe4f   :  { %v1764_v7 = vadd.f32 %v2325_v15, %v1763_v59 }
 0xe51   :  { %v1771_v24 = vmax.f32 %v1764_v7, 0.0 }
 0xe53   :  { %v1774_v33 = vpack.c.bf16 %v1771_v24, %v1771_v24 }
 0xe56   :  { %v1765_v28 = vpop.f32.mrf.mxu1 }
 0xe5d   :  { %1861 = vmatmul.bf16.gmra.mxu3 %v1774_v33 }
 0xea1   :  { %v1852_v34 = vpop.f32.mrf.mxu3 }
 0xea2   :  { %v1853_v27 = vadd.f32 %v2326_v37, %v1852_v34 }
 0xea4   :  { %v1866_v46 = vadd.f32 %v1853_v27, %v3183_v25 }
 0xea6   :  { %v1871_v62 = vsel %vm196_vm1, %v1866_v46, 0.0 }
 0xea9   :  { %v1854_v31 = vpop.f32.mrf.mxu3 }
 0xeaa   :  { %v1855_v58 = vadd.f32 %v2326_v37, %v1854_v31 }
 0xeac   :  { %v1867_v0 = vadd.f32 %v1855_v58, %v3186_v26 }
 0xeae   :  { %v1874_v52 = vsel %vm196_vm1, %v1867_v0, 0.0 }
 0xed0   :  { %v1857_v29 = vpop.f32.mrf.mxu3 }
 0xed1   :  { %v1858_v56 = vadd.f32 %v2326_v37, %v1857_v29 }
 0xed3   :  { %v1868_v45 = vadd.f32 %v1858_v56, %v1707_v50 }
 0xed5   :  { %v1877_v39 = vsel %vm196_vm1, %v1868_v45, 0.0 }
 0xed6   :  { %1878 = vadd.xlane.f32.xlu1 %v1877_v39 }
 0xed8   :  { %v1859_v43 = vpop.f32.mrf.mxu3 }
 0xed9   :  { %v1860_v44 = vadd.f32 %v2326_v37, %v1859_v43 }
 0xedb   :  { %v1869_v40 = vadd.f32 %v1860_v44, %v1708_v36 }
 0xedd   :  { %v1880_v48 = vsel %vm196_vm1, %v1869_v40, 0.0 }
 0xede   :  { %1881 = vadd.xlane.f32.xlu2 %v1880_v48 }
 0xee0   :  { %v1862_v35 = vpop.f32.mrf.mxu3 }
 0xee1   :  { %v1863_v41 = vadd.f32 %v2326_v37, %v1862_v35 }
 0xee3   :  { %v1870_v51 = vadd.f32 %v1863_v41, %v1709_v13 }
 0xee5   :  { %v1883_v60 = vsel %vm196_vm1, %v1870_v51, 0.0 }
 0xee6   :  { %1884 = vadd.xlane.f32.xlu0 %v1883_v60  ;;  %1872 = vadd.xlane.f32.xlu2 %v1871_v62 }
 0xee8   :  { %v1864_v63 = vpop.f32.mrf.mxu3 }
 0xeee   :  { %1875 = vadd.xlane.f32.xlu0 %v1874_v52 }
 0xf49   :  { %v1879_v1 = vpop.xlane.xlu1 %1878 }
 0xf4a   :  { %v1888_v2 = vmul.f32 %v1879_v1, %v2797_v42 }
 0xf4c   :  { %v3243_v49 = vsub.f32 %v1868_v45, %v1888_v2 }
 0xf4e   :  { %v1898_v25 = vmul.f32 %v3243_v49, %v3243_v49 }
 0xf50   :  { %v1907_v38 = vsel %vm196_vm1, %v1898_v25, 0.0 }
 0xf51   :  { %v1882_v47 = vpop.xlane.xlu2 %1881  ;;  %1908 = vadd.xlane.f32.xlu2 %v1907_v38 }
 0xf52   :  { %v1889_v4 = vmul.f32 %v1882_v47, %v2797_v42 }
 0xf54   :  { %v3249_v50 = vsub.f32 %v1869_v40, %v1889_v4 }
 0xf56   :  { %v1899_v26 = vmul.f32 %v3249_v50, %v3249_v50 }
 0xf58   :  { %v1910_v36 = vsel %vm196_vm1, %v1899_v26, 0.0 }
 0xf59   :  { %v1885_v53 = vpop.xlane.xlu0 %1884  ;;  %1911 = vadd.xlane.f32.xlu0 %v1910_v36  ;;  %v1873_v54 = vpop.xlane.xlu2 %1872  ;;  %v2327_v36 = vld [vmem:[%s3320_s13 + $0x9] ss:$0 sm:$0xff] }
 0xf5a   :  { %v1890_v8 = vmul.f32 %v1885_v53, %v2797_v42  ;;  %v1886_v9 = vmul.f32 %v1873_v54, %v2797_v42 }
 0xf5c   :  { %v3256_v10 = vsub.f32 %v1870_v51, %v1890_v8  ;;  %v3258_v13 = vsub.f32 %v1866_v46, %v1886_v9 }
 0xf5e   :  { %v1896_v14 = vmul.f32 %v3258_v13, %v3258_v13  ;;  %v1900_v57 = vmul.f32 %v3256_v10, %v3256_v10 }
 0xf60   :  { %v1901_v61 = vsel %vm196_vm1, %v1896_v14, 0.0  ;;  %v1913_v3 = vsel %vm196_vm1, %v1900_v57, 0.0 }
 0xf61   :  { %v1876_v55 = vpop.xlane.xlu0 %1875  ;;  %1902 = vadd.xlane.f32.xlu0 %v1901_v61  ;;  %1914 = vadd.xlane.f32.xlu1 %v1913_v3  ;;  %v2328_v61 = vld [vmem:[%s3320_s13 + $0xa] ss:$0 sm:$0xff] }
 0xf62   :  { %v1887_v5 = vmul.f32 %v1876_v55, %v2797_v42 }
 0xf64   :  { %v3267_v15 = vsub.f32 %v1867_v0, %v1887_v5 }
 0xf66   :  { %v1897_v16 = vmul.f32 %v3267_v15, %v3267_v15 }
 0xf68   :  { %v1904_v17 = vsel %vm196_vm1, %v1897_v16, 0.0 }
 0xf69   :  { %1905 = vadd.xlane.f32.xlu1 %v1904_v17 }
 0xfc4   :  { %v1909_v18 = vpop.xlane.xlu2 %1908 }
 0xfc5   :  { %v1918_v6 = vmul.f32 %v1909_v18, %v2797_v42 }
 0xfc7   :  { %v1923_v19 = vadd.f32 1e-05, %v1918_v6 }
 0xfc9   :  { %2442 = vrsqrt.f32 %v1923_v19  ;;  %vm1952_vm14 = vweird.f32 %v1923_v19 }
 0xfcc   :  { %v1912_v11 = vpop.xlane.xlu0 %1911 }
 0xfcd   :  { %v1919_v22 = vmul.f32 %v1912_v11, %v2797_v42 }
 0xfcf   :  { %v1924_v23 = vadd.f32 1e-05, %v1919_v22  ;;  %v2443_v21 = vpop.eup %2442 }
 0xfd0   :  { %v1947_v20 = vmul.f32 %v2443_v21, %v1923_v19  ;;  %vm1953_vm12 = vweird.f32 %v2443_v21 }
 0xfd1   :  { %2444 = vrsqrt.f32 %v1924_v23  ;;  %vm1962_vm11 = vweird.f32 %v1924_v23  ;;  %vm1954_vm4 = vmor %vm1952_vm14, %vm1953_vm12 }
 0xfd2   :  { %v1948_v34 = vmul.f32 %v2443_v21, %v1947_v20  ;;  %v2329_v20 = vld [vmem:[%s3326_s15] ss:$0 sm:$0xff] }
 0xfd4   :  { %v1903_v12 = vpop.xlane.xlu0 %1902  ;;  %v1915_v32 = vpop.xlane.xlu1 %1914  ;;  %v1949_v56 = vmul.f32 0.5, %v1948_v34 }
 0xfd5   :  { %v1916_v30 = vmul.f32 %v1903_v12, %v2797_v42  ;;  %v1920_v59 = vmul.f32 %v1915_v32, %v2797_v42  ;;  %v2021_v12 = vld [vmem:[%s3325_s14] sm:$0xff] }
 0xfd6   :  { %v1950_v48 = vsub.f32 1.5, %v1949_v56 }
 0xfd7   :  { %v2445_v7 = vpop.eup %2444  ;;  %v1921_v28 = vadd.f32 1e-05, %v1916_v30  ;;  %v1925_v24 = vadd.f32 1e-05, %v1920_v59 }
 0xfd8   :  { %v1957_v33 = vmul.f32 %v2445_v7, %v1924_v23  ;;  %vm1963_vm3 = vweird.f32 %v2445_v7  ;;  %v1951_v60 = vmul.f32 %v2443_v21, %v1950_v48  ;;  %v1997_v23 = vld [vmem:[%s3324_s4] sm:$0xff] }
 0xfd9   :  { %2446 = vrsqrt.f32 %v1921_v28  ;;  %vm1964_vm13 = vmor %vm1962_vm11, %vm1963_vm3  ;;  %vm1972_vm5 = vweird.f32 %v1925_v24  ;;  %vm1932_vm8 = vweird.f32 %v1921_v28 }
 0xfda   :  { %v1958_v31 = vmul.f32 %v2445_v7, %v1957_v33  ;;  %2448 = vrsqrt.f32 %v1925_v24  ;;  %v1955_v2 = vsel %vm1954_vm4, %v2443_v21, %v1951_v60  ;;  %v2022_v21 = vld [vmem:[%s3325_s14 + $0x8] sm:$0xff] }
 0xfdb   :  { %v1978_v8 = vmul.f32 %v1955_v2, %v3243_v49 }
 0xfdc   :  { %v1959_v37 = vmul.f32 0.5, %v1958_v31  ;;  %v1906_v29 = vpop.xlane.xlu1 %1905 }
 0xfdd   :  { %v1917_v45 = vmul.f32 %v1906_v29, %v2797_v42  ;;  %v1986_v5 = vmul.f32 %v2327_v36, %v1978_v8 }
 0xfde   :  { %v1960_v39 = vsub.f32 1.5, %v1959_v37 }
 0xfdf   :  { %v2447_v43 = vpop.eup %2446  ;;  %v1922_v44 = vadd.f32 1e-05, %v1917_v45  ;;  %v1994_v18 = vadd.f32 %v2328_v61, %v1986_v5 }
 0xfe0   :  { %v2449_v40 = vpop.eup %2448  ;;  %v1927_v27 = vmul.f32 %v2447_v43, %v1921_v28  ;;  %v1961_v41 = vmul.f32 %v2445_v7, %v1960_v39  ;;  %vm1933_vm6 = vweird.f32 %v2447_v43 }
 0xfe1   :  { %v1967_v35 = vmul.f32 %v2449_v40, %v1925_v24  ;;  %2450 = vrsqrt.f32 %v1922_v44  ;;  %vm1973_vm15 = vweird.f32 %v2449_v40  ;;  %vm1934_vm9 = vmor %vm1932_vm8, %vm1933_vm6  ;;  %vm1942_vm0 = vweird.f32 %v1922_v44 }
 0xfe2   :  { %v1928_v46 = vmul.f32 %v2447_v43, %v1927_v27  ;;  %v1965_v63 = vsel %vm1964_vm13, %v2445_v7, %v1961_v41  ;;  %vm1974_vm7 = vmor %vm1972_vm5, %vm1973_vm15 }
 0xfe3   :  { %v1968_v51 = vmul.f32 %v2449_v40, %v1967_v35  ;;  %v1979_v38 = vmul.f32 %v1965_v63, %v3249_v50 }
 0xfe4   :  { %v1929_v58 = vmul.f32 0.5, %v1928_v46 }
 0xfe5   :  { %v1969_v62 = vmul.f32 0.5, %v1968_v51  ;;  %v1987_v9 = vmul.f32 %v2327_v36, %v1979_v38 }
 0xfe6   :  { %v1930_v42 = vsub.f32 1.5, %v1929_v58 }
 0xfe7   :  { %v2451_v0 = vpop.eup %2450  ;;  %v1970_v52 = vsub.f32 1.5, %v1969_v62  ;;  %v1995_v49 = vadd.f32 %v2328_v61, %v1987_v9 }
 0xfe8   :  { %v1937_v1 = vmul.f32 %v2451_v0, %v1922_v44  ;;  %v1931_v47 = vmul.f32 %v2447_v43, %v1930_v42  ;;  %vm1943_vm10 = vweird.f32 %v2451_v0 }
 0xfe9   :  { %v1971_v25 = vmul.f32 %v2449_v40, %v1970_v52  ;;  %vm1944_vm3 = vmor %vm1942_vm0, %vm1943_vm10 }
 0xfea   :  { %v1938_v4 = vmul.f32 %v2451_v0, %v1937_v1  ;;  %v1935_v14 = vsel %vm1934_vm9, %v2447_v43, %v1931_v47 }
 0xfeb   :  { %v1975_v26 = vsel %vm1974_vm7, %v2449_v40, %v1971_v25 }
 0xfec   :  { %v1980_v53 = vmul.f32 %v1975_v26, %v3256_v10  ;;  %v1939_v54 = vmul.f32 0.5, %v1938_v4  ;;  %v1976_v10 = vmul.f32 %v1935_v14, %v3258_v13  ;;  %v2024_v13 = vld [vmem:[%s3325_s14 + $0x18] sm:$0xff] }
 0xfee   :  { %v1940_v57 = vsub.f32 1.5, %v1939_v54  ;;  %v1988_v50 = vmul.f32 %v2327_v36, %v1980_v53  ;;  %v1984_v19 = vmul.f32 %v2327_v36, %v1976_v10 }
 0xff0   :  { %v1941_v3 = vmul.f32 %v2451_v0, %v1940_v57  ;;  %v1996_v55 = vadd.f32 %v2328_v61, %v1988_v50  ;;  %v1992_v22 = vadd.f32 %v2328_v61, %v1984_v19 }
 0xff2   :  { %v1945_v16 = vsel %vm1944_vm3, %v2451_v0, %v1941_v3  ;;  %2012 = vmatpush.msrb.mxu2 %v1996_v55 }
 0xff3   :  { %v1977_v17 = vmul.f32 %v1945_v16, %v3267_v15  ;;  %v2023_v15 = vld [vmem:[%s3325_s14 + $0x10] sm:$0xff] }
 0xff4   :  { %2013 = vmatpush.msrb.mxu2 %v1995_v49 }
 0xff5   :  { %v1985_v6 = vmul.f32 %v2327_v36, %v1977_v17 }
 0xff6   :  { %2014 = vmatpush.msrb.mxu2 %v1994_v18 }
 0xff7   :  { %v1993_v11 = vadd.f32 %v2328_v61, %v1985_v6 }
 0xff9   :  { %2015 = vmatpush.msrb.mxu2 %v1993_v11 }
 0xffb   :  { %2016 = vmatpush.msrb.mxu2 %v1992_v22 }
 0xffc   :  { %2268 = vmatmul.msk.f32.vlgmr.msrb.gmra.mxu2 %vm292_vm2, %v1997_v23  ;;  %vm2052_vm2 = vcmask 23552  }
 0xffd   :  { %2044 = vmatpush.msra.mxu2 %v2024_v13 }
 0xfff   :  { %2045 = vmatpush.msra.mxu2 %v2023_v15 }
0x1001   :  { %2046 = vmatpush.msra.mxu2 %v2022_v21 }
0x1003   :  { %2047 = vmatpush.msra.mxu2 %v2021_v12 }
0x107f   :  { %v2018_v32 = vpop.f32.mrf.mxu2 }
0x1080   :  { %2269 = vmatmul.msk.f32.vlgmr.msra.gmra.mxu2 %vm196_vm1, %v2018_v32 }
0x1103   :  { %v2049_v30 = vpop.f32.mrf.mxu2 }
0x1104   :  { %v2050_v59 = vadd.f32 %v2329_v20, %v2049_v30 }
0x1106   :  { %2053 = vst.msk [vmem:[%s3327_s16] sm:$0xff] %vm2052_vm2, %v2050_v59 }

</bundles_post_ra>
